<compile_context>
chip_gen: v6e
topology: v6e:2x2x1
jax: 0.10.0
libtpu: 0.0.40
codegen_flags: <defaults>
</compile_context>

<pallas_src>
import functools

import jax
import jax.numpy as jnp
import numpy as np
from jax import lax
from jax.experimental import pallas as pl
from jax.experimental.pallas import tpu as pltpu

BN_EPS = 1e-5   # PyTorch BatchNorm1d default
PAD = 128       # lane width: every feature dim is padded to this


def _make_mlp_kernel(n_hidden, groups_per_block, group_batch, in_features):
    """Fused kernel over one block of `groups_per_block` independent batches.

    Refs:
      x   (1, rows, in_features) f32  with rows = groups_per_block * group_batch
      w   (n_layers, PAD, PAD)   f32  layer i weight stored as (in, out), zero-padded
      v   (R, PAD)               f32  rows [g0, b0, g1, b1, ..., bias_last], zero-padded
      out (1, rows, PAD)         f32
    Zero padding is self-consistent: padded weight rows/cols and padded
    gamma/beta lanes are zero, so padded lanes never influence real lanes.
    """

    def kernel(x_ref, w_ref, v_ref, out_ref):
        # First Linear. Hidden-layer bias omitted: BN mean-subtraction cancels it.
        # Padded weight rows are zero, so slicing to the true input width is exact.
        w_first = w_ref[0][:in_features, :]                       # (in_features, PAD)
        h = jnp.dot(x_ref[0], w_first,
                    preferred_element_type=jnp.float32)           # (rows, PAD)

        for i in range(n_hidden):
            if i > 0:
                h = jnp.dot(h, w_ref[i], preferred_element_type=jnp.float32)

            gamma = v_ref[pl.ds(2 * i, 1), :]                     # (1, PAD)
            beta = v_ref[pl.ds(2 * i + 1, 1), :]                  # (1, PAD)

            # BatchNorm1d (training mode, biased batch stats) per independent
            # group of rows, affine folded in. mean and E[h^2] are independent
            # reductions (shorter critical path than the centered two-pass form).
            parts = []
            for j in range(groups_per_block):
                hg = lax.slice_in_dim(h, j * group_batch,
                                      (j + 1) * group_batch, axis=0)
                mean = jnp.mean(hg, axis=0, keepdims=True)        # (1, PAD)
                mean_sq = jnp.mean(hg * hg, axis=0, keepdims=True)
                var = jnp.maximum(mean_sq - mean * mean, 0.0)
                scale = gamma * lax.rsqrt(var + BN_EPS)           # gamma/sqrt(var+eps)
                shift = beta - mean * scale
                hn = hg * scale + shift                           # single FMA/elem
                # Sigmoid on the EUP: sigma(x) = 0.5*tanh(0.5*x) + 0.5
                parts.append(0.5 * jnp.tanh(0.5 * hn) + 0.5)
            h = parts[0] if groups_per_block == 1 else jnp.concatenate(parts, axis=0)

        # Final Linear (with bias, no BN / activation). Lane-dense (rows, PAD) store.
        w_last = w_ref[n_hidden]
        b_last = v_ref[pl.ds(2 * n_hidden, 1), :]
        out_ref[0] = jnp.dot(h, w_last, preferred_element_type=jnp.float32) + b_last

    return kernel


def init_params(key, size_list):
    """Deterministic init mimicking PyTorch defaults.

    Linear: weight (out, in) ~ U(-1/sqrt(in), 1/sqrt(in)), bias same range.
    BatchNorm1d: gamma = 1, beta = 0.
    """
    params = []
    n_layers = len(size_list) - 1
    for i in range(n_layers):
        fan_in, fan_out = size_list[i], size_list[i + 1]
        key, kw, kb = jax.random.split(key, 3)
        bound = 1.0 / np.sqrt(fan_in)
        w = jax.random.uniform(kw, (fan_out, fan_in), jnp.float32, -bound, bound)
        b = jax.random.uniform(kb, (fan_out,), jnp.float32, -bound, bound)
        layer = {"w": w, "b": b}
        if i < n_layers - 1:  # hidden layers also get a BatchNorm1d
            layer["gamma"] = jnp.ones((fan_out,), jnp.float32)
            layer["beta"] = jnp.zeros((fan_out,), jnp.float32)
        params.append(layer)
    return params


def pack_params_for_kernel(params, pad=PAD):
    """Packs all parameters into two lane-dense, zero-padded buffers.

    Returns:
      w_packed: (n_layers, pad, pad) f32 -- layer i weight stored as (in, out).
      v_packed: (R, pad) f32 -- rows [gamma_0, beta_0, ..., gamma_{H-1}, beta_{H-1},
                bias_last], R padded up to a multiple of 8 sublanes.
      Hidden-layer Linear biases are intentionally NOT packed (cancelled by BN).
    """
    n_layers = len(params)
    n_hidden = n_layers - 1

    w_buf = np.zeros((n_layers, pad, pad), np.float32)
    for i, layer in enumerate(params):
        w_t = np.asarray(layer["w"]).T  # (in, out)
        fi, fo = w_t.shape
        w_buf[i, :fi, :fo] = w_t

    n_rows = 2 * n_hidden + 1
    n_rows_pad = ((n_rows + 7) // 8) * 8
    v_buf = np.zeros((n_rows_pad, pad), np.float32)
    for i in range(n_hidden):
        fo = params[i]["w"].shape[0]
        v_buf[2 * i, :fo] = np.asarray(params[i]["gamma"])
        v_buf[2 * i + 1, :fo] = np.asarray(params[i]["beta"])
    fo_last = params[-1]["w"].shape[0]
    v_buf[2 * n_hidden, :fo_last] = np.asarray(params[-1]["b"])

    return jnp.asarray(w_buf), jnp.asarray(v_buf)


def _pick_groups_per_block(n_groups, batch):
    """Largest divisor of n_groups whose row-stack is <= ~128 rows per dot."""
    target = max(1, 128 // max(batch, 1))
    best = 1
    for cand in range(1, min(n_groups, target) + 1):
        if n_groups % cand == 0:
            best = cand
    return best


def _vmem_limit_bytes(n_layers, v_rows, rows, in_features, pad):
    """Derived scoped-VMEM budget: resident params + double-buffered blocks + acts."""
    w_bytes = n_layers * pad * pad * 4
    v_bytes = v_rows * pad * 4
    x_blk = rows * in_features * 4
    o_blk = rows * pad * 4
    act = rows * pad * 4
    total = 2 * (w_bytes + v_bytes + x_blk + o_blk) + 8 * act + (1 << 20)
    total = max(total, 4 << 20)
    total = -(-total // (1 << 20)) * (1 << 20)      # round up to MiB
    return int(min(total, 64 << 20))                # stay well under v7x physical VMEM


@functools.partial(jax.jit, static_argnames=("n_hidden", "in_features", "out_features"))
def net_forward(x, w_packed, v_packed, n_hidden, in_features, out_features):
    """Runs the fused Pallas MLP kernel.

    x: (G, B, in_features) -- G independent forward batches (BatchNorm statistics
       are computed per batch of size B, exactly like G separate Net.forward calls),
       or (B, in_features) for a single batch.
    Returns (G, B, out_features) (or (B, out_features) for 2-D input).
    """
    squeeze = x.ndim == 2
    if squeeze:
        x = x[None]
    n_groups, batch, feat = x.shape
    assert feat == in_features

    n_layers = w_packed.shape[0]
    pad = w_packed.shape[-1]

    gpb = _pick_groups_per_block(n_groups, batch)
    n_blocks = n_groups // gpb
    rows = gpb * batch

    # Row-stack gpb groups per grid block; reshape is a free layout view in XLA.
    x_blk = x.reshape(n_blocks, rows, in_features)

    kernel = _make_mlp_kernel(n_hidden, gpb, batch, in_features)
    vmem = _vmem_limit_bytes(n_layers, v_packed.shape[0], rows, in_features, pad)

    out = pl.pallas_call(
        kernel,
        out_shape=jax.ShapeDtypeStruct((n_blocks, rows, pad), jnp.float32),
        grid=(n_blocks,),
        in_specs=[
            pl.BlockSpec((1, rows, in_features), lambda g: (g, 0, 0)),
            pl.BlockSpec((n_layers, pad, pad), lambda g: (0, 0, 0)),   # resident
            pl.BlockSpec(v_packed.shape, lambda g: (0, 0)),            # resident
        ],
        out_specs=pl.BlockSpec((1, rows, pad), lambda g: (g, 0, 0)),
        compiler_params=pltpu.CompilerParams(
            dimension_semantics=("parallel",),      # shard groups across TCs on v7x
            vmem_limit_bytes=vmem,
        ),
    )(x_blk, w_packed, v_packed)

    out = out.reshape(n_groups, batch, pad)[:, :, :out_features]
    if squeeze:
        out = out[0]
    return out


def reference_forward(x, params):
    """Pure-JAX reference matching the PyTorch training-mode forward exactly."""
    h = x
    for i, layer in enumerate(params):
        h = h @ layer["w"].T + layer["b"]
        if i < len(params) - 1:
            mean = jnp.mean(h, axis=0, keepdims=True)
            var = jnp.mean((h - mean) ** 2, axis=0, keepdims=True)
            h = (h - mean) / jnp.sqrt(var + BN_EPS)
            h = layer["gamma"] * h + layer["beta"]
            h = jax.nn.sigmoid(h)
    return h


if __name__ == "__main__":
    # Net([32, 64, 64, 8]); 16 independent batches of 16 vectors are amortized
    # into one launch (2 grid steps x 8 row-stacked groups of 16 rows each).
    # BN batch statistics are per group of 16, matching 16 separate forward calls.
    size_list = [32, 64, 64, 8]
    batch = 16
    n_groups = 16
    n_hidden = len(size_list) - 2

    key = jax.random.PRNGKey(0)
    key, kx = jax.random.split(key)
    x = jax.random.normal(kx, (n_groups, batch, size_list[0]), jnp.float32)

    params = init_params(key, size_list)
    w_packed, v_packed = pack_params_for_kernel(params)

    out = net_forward(x, w_packed, v_packed, n_hidden, size_list[0], size_list[-1])
    out = jax.block_until_ready(out)

    ref = jnp.stack([reference_forward(x[g], params) for g in range(n_groups)])
    np.testing.assert_allclose(np.asarray(out), np.asarray(ref), rtol=1e-4, atol=1e-4)

    # TODO(synk): BatchNorm1d running-mean/var buffer updates (training side effects)
    # are not materialized; only the forward output is produced.
    print("KERNEL_OK")
</pallas_src>

<mosaic_0001>
module attributes {stable_mosaic.version = 11 : i64} {
  func.func @kernel(%arg0: i32, %arg1: memref<1x128x32xf32, #tpu.memory_space<vmem>>, %arg2: memref<3x128x128xf32, #tpu.memory_space<vmem>>, %arg3: memref<8x128xf32, #tpu.memory_space<vmem>>, %arg4: memref<1x128x128xf32, #tpu.memory_space<vmem>>) attributes {dimension_semantics = [#tpu.dimension_semantics<parallel>], iteration_bounds = array<i64: 2>, scalar_prefetch = 0 : i64, scratch_operands = 0 : i64, tpu.core_type = #tpu.core_type<tc>, window_params = [{transform_indices = @transform_0, window_bounds = array<i64: 1, 128, 32>}, {pipeline_mode = #tpu.pipeline_mode<synchronous>, transform_indices = @transform_1, window_bounds = array<i64: 3, 128, 128>}, {pipeline_mode = #tpu.pipeline_mode<synchronous>, transform_indices = @transform_2, window_bounds = array<i64: 8, 128>}, {transform_indices = @transform_3, window_bounds = array<i64: 1, 128, 128>}]} {
    %c0 = arith.constant 0 : index
    %c0_0 = arith.constant 0 : index
    %c0_1 = arith.constant 0 : index
    %0 = vector.load %arg2[%c0, %c0_0, %c0_1] : memref<3x128x128xf32, #tpu.memory_space<vmem>>, vector<1x128x128xf32>
    %1 = vector.shape_cast %0 : vector<1x128x128xf32> to vector<128x128xf32>
    %2 = vector.extract_strided_slice %1 {offsets = [0, 0], sizes = [32, 128], strides = [1, 1]} : vector<128x128xf32> to vector<32x128xf32>
    %c0_2 = arith.constant 0 : index
    %c0_3 = arith.constant 0 : index
    %c0_4 = arith.constant 0 : index
    %3 = vector.load %arg1[%c0_2, %c0_3, %c0_4] : memref<1x128x32xf32, #tpu.memory_space<vmem>>, vector<1x128x32xf32>
    %4 = vector.shape_cast %3 : vector<1x128x32xf32> to vector<128x32xf32>
    %cst = arith.constant dense<0.000000e+00> : vector<128x128xf32>
    %5 = tpu.matmul %4, %2, %cst {dimension_numbers = #tpu.dot_dimension_numbers<[1], [0], [0], [1], [0, 0, 1, 1], [], []>} : vector<128x32xf32>, vector<32x128xf32>, vector<128x128xf32> -> vector<128x128xf32>
    %c0_5 = arith.constant 0 : index
    %c0_6 = arith.constant 0 : index
    %6 = vector.load %arg3[%c0_5, %c0_6] : memref<8x128xf32, #tpu.memory_space<vmem>>, vector<1x128xf32>
    %c1 = arith.constant 1 : index
    %c0_7 = arith.constant 0 : index
    %7 = vector.load %arg3[%c1, %c0_7] : memref<8x128xf32, #tpu.memory_space<vmem>>, vector<1x128xf32>
    %8 = vector.extract_strided_slice %5 {offsets = [0, 0], sizes = [16, 128], strides = [1, 1]} : vector<128x128xf32> to vector<16x128xf32>
    %cst_8 = arith.constant dense<0.000000e+00> : vector<128xf32>
    %9 = vector.multi_reduction <add>, %8, %cst_8 [0] : vector<16x128xf32> to vector<128xf32>
    %10 = vector.shape_cast %9 : vector<128xf32> to vector<1x128xf32>
    %cst_9 = arith.constant 1.600000e+01 : f32
    %11 = vector.broadcast %cst_9 : f32 to vector<1x128xf32>
    %12 = arith.divf %10, %11 : vector<1x128xf32>
    %13 = arith.mulf %8, %8 : vector<16x128xf32>
    %cst_10 = arith.constant dense<0.000000e+00> : vector<128xf32>
    %14 = vector.multi_reduction <add>, %13, %cst_10 [0] : vector<16x128xf32> to vector<128xf32>
    %15 = vector.shape_cast %14 : vector<128xf32> to vector<1x128xf32>
    %cst_11 = arith.constant 1.600000e+01 : f32
    %16 = vector.broadcast %cst_11 : f32 to vector<1x128xf32>
    %17 = arith.divf %15, %16 : vector<1x128xf32>
    %18 = arith.mulf %12, %12 : vector<1x128xf32>
    %19 = arith.subf %17, %18 : vector<1x128xf32>
    %cst_12 = arith.constant 0.000000e+00 : f32
    %20 = vector.broadcast %cst_12 : f32 to vector<1x128xf32>
    %21 = arith.maximumf %19, %20 : vector<1x128xf32>
    %cst_13 = arith.constant 9.99999974E-6 : f32
    %22 = vector.broadcast %cst_13 : f32 to vector<1x128xf32>
    %23 = arith.addf %21, %22 : vector<1x128xf32>
    %24 = math.rsqrt %23 : vector<1x128xf32>
    %25 = arith.mulf %6, %24 : vector<1x128xf32>
    %26 = arith.mulf %12, %25 : vector<1x128xf32>
    %27 = arith.subf %7, %26 : vector<1x128xf32>
    %28 = vector.broadcast %25 : vector<1x128xf32> to vector<16x128xf32>
    %29 = arith.mulf %8, %28 : vector<16x128xf32>
    %30 = vector.broadcast %27 : vector<1x128xf32> to vector<16x128xf32>
    %31 = arith.addf %29, %30 : vector<16x128xf32>
    %cst_14 = arith.constant 5.000000e-01 : f32
    %32 = vector.broadcast %cst_14 : f32 to vector<16x128xf32>
    %33 = arith.mulf %32, %31 : vector<16x128xf32>
    %34 = math.tanh %33 : vector<16x128xf32>
    %cst_15 = arith.constant 5.000000e-01 : f32
    %35 = vector.broadcast %cst_15 : f32 to vector<16x128xf32>
    %36 = arith.mulf %35, %34 : vector<16x128xf32>
    %cst_16 = arith.constant 5.000000e-01 : f32
    %37 = vector.broadcast %cst_16 : f32 to vector<16x128xf32>
    %38 = arith.addf %36, %37 : vector<16x128xf32>
    %39 = vector.extract_strided_slice %5 {offsets = [16, 0], sizes = [16, 128], strides = [1, 1]} : vector<128x128xf32> to vector<16x128xf32>
    %cst_17 = arith.constant dense<0.000000e+00> : vector<128xf32>
    %40 = vector.multi_reduction <add>, %39, %cst_17 [0] : vector<16x128xf32> to vector<128xf32>
    %41 = vector.shape_cast %40 : vector<128xf32> to vector<1x128xf32>
    %cst_18 = arith.constant 1.600000e+01 : f32
    %42 = vector.broadcast %cst_18 : f32 to vector<1x128xf32>
    %43 = arith.divf %41, %42 : vector<1x128xf32>
    %44 = arith.mulf %39, %39 : vector<16x128xf32>
    %cst_19 = arith.constant dense<0.000000e+00> : vector<128xf32>
    %45 = vector.multi_reduction <add>, %44, %cst_19 [0] : vector<16x128xf32> to vector<128xf32>
    %46 = vector.shape_cast %45 : vector<128xf32> to vector<1x128xf32>
    %cst_20 = arith.constant 1.600000e+01 : f32
    %47 = vector.broadcast %cst_20 : f32 to vector<1x128xf32>
    %48 = arith.divf %46, %47 : vector<1x128xf32>
    %49 = arith.mulf %43, %43 : vector<1x128xf32>
    %50 = arith.subf %48, %49 : vector<1x128xf32>
    %cst_21 = arith.constant 0.000000e+00 : f32
    %51 = vector.broadcast %cst_21 : f32 to vector<1x128xf32>
    %52 = arith.maximumf %50, %51 : vector<1x128xf32>
    %cst_22 = arith.constant 9.99999974E-6 : f32
    %53 = vector.broadcast %cst_22 : f32 to vector<1x128xf32>
    %54 = arith.addf %52, %53 : vector<1x128xf32>
    %55 = math.rsqrt %54 : vector<1x128xf32>
    %56 = arith.mulf %6, %55 : vector<1x128xf32>
    %57 = arith.mulf %43, %56 : vector<1x128xf32>
    %58 = arith.subf %7, %57 : vector<1x128xf32>
    %59 = vector.broadcast %56 : vector<1x128xf32> to vector<16x128xf32>
    %60 = arith.mulf %39, %59 : vector<16x128xf32>
    %61 = vector.broadcast %58 : vector<1x128xf32> to vector<16x128xf32>
    %62 = arith.addf %60, %61 : vector<16x128xf32>
    %cst_23 = arith.constant 5.000000e-01 : f32
    %63 = vector.broadcast %cst_23 : f32 to vector<16x128xf32>
    %64 = arith.mulf %63, %62 : vector<16x128xf32>
    %65 = math.tanh %64 : vector<16x128xf32>
    %cst_24 = arith.constant 5.000000e-01 : f32
    %66 = vector.broadcast %cst_24 : f32 to vector<16x128xf32>
    %67 = arith.mulf %66, %65 : vector<16x128xf32>
    %cst_25 = arith.constant 5.000000e-01 : f32
    %68 = vector.broadcast %cst_25 : f32 to vector<16x128xf32>
    %69 = arith.addf %67, %68 : vector<16x128xf32>
    %70 = vector.extract_strided_slice %5 {offsets = [32, 0], sizes = [16, 128], strides = [1, 1]} : vector<128x128xf32> to vector<16x128xf32>
    %cst_26 = arith.constant dense<0.000000e+00> : vector<128xf32>
    %71 = vector.multi_reduction <add>, %70, %cst_26 [0] : vector<16x128xf32> to vector<128xf32>
    %72 = vector.shape_cast %71 : vector<128xf32> to vector<1x128xf32>
    %cst_27 = arith.constant 1.600000e+01 : f32
    %73 = vector.broadcast %cst_27 : f32 to vector<1x128xf32>
    %74 = arith.divf %72, %73 : vector<1x128xf32>
    %75 = arith.mulf %70, %70 : vector<16x128xf32>
    %cst_28 = arith.constant dense<0.000000e+00> : vector<128xf32>
    %76 = vector.multi_reduction <add>, %75, %cst_28 [0] : vector<16x128xf32> to vector<128xf32>
    %77 = vector.shape_cast %76 : vector<128xf32> to vector<1x128xf32>
    %cst_29 = arith.constant 1.600000e+01 : f32
    %78 = vector.broadcast %cst_29 : f32 to vector<1x128xf32>
    %79 = arith.divf %77, %78 : vector<1x128xf32>
    %80 = arith.mulf %74, %74 : vector<1x128xf32>
    %81 = arith.subf %79, %80 : vector<1x128xf32>
    %cst_30 = arith.constant 0.000000e+00 : f32
    %82 = vector.broadcast %cst_30 : f32 to vector<1x128xf32>
    %83 = arith.maximumf %81, %82 : vector<1x128xf32>
    %cst_31 = arith.constant 9.99999974E-6 : f32
    %84 = vector.broadcast %cst_31 : f32 to vector<1x128xf32>
    %85 = arith.addf %83, %84 : vector<1x128xf32>
    %86 = math.rsqrt %85 : vector<1x128xf32>
    %87 = arith.mulf %6, %86 : vector<1x128xf32>
    %88 = arith.mulf %74, %87 : vector<1x128xf32>
    %89 = arith.subf %7, %88 : vector<1x128xf32>
    %90 = vector.broadcast %87 : vector<1x128xf32> to vector<16x128xf32>
    %91 = arith.mulf %70, %90 : vector<16x128xf32>
    %92 = vector.broadcast %89 : vector<1x128xf32> to vector<16x128xf32>
    %93 = arith.addf %91, %92 : vector<16x128xf32>
    %cst_32 = arith.constant 5.000000e-01 : f32
    %94 = vector.broadcast %cst_32 : f32 to vector<16x128xf32>
    %95 = arith.mulf %94, %93 : vector<16x128xf32>
    %96 = math.tanh %95 : vector<16x128xf32>
    %cst_33 = arith.constant 5.000000e-01 : f32
    %97 = vector.broadcast %cst_33 : f32 to vector<16x128xf32>
    %98 = arith.mulf %97, %96 : vector<16x128xf32>
    %cst_34 = arith.constant 5.000000e-01 : f32
    %99 = vector.broadcast %cst_34 : f32 to vector<16x128xf32>
    %100 = arith.addf %98, %99 : vector<16x128xf32>
    %101 = vector.extract_strided_slice %5 {offsets = [48, 0], sizes = [16, 128], strides = [1, 1]} : vector<128x128xf32> to vector<16x128xf32>
    %cst_35 = arith.constant dense<0.000000e+00> : vector<128xf32>
    %102 = vector.multi_reduction <add>, %101, %cst_35 [0] : vector<16x128xf32> to vector<128xf32>
    %103 = vector.shape_cast %102 : vector<128xf32> to vector<1x128xf32>
    %cst_36 = arith.constant 1.600000e+01 : f32
    %104 = vector.broadcast %cst_36 : f32 to vector<1x128xf32>
    %105 = arith.divf %103, %104 : vector<1x128xf32>
    %106 = arith.mulf %101, %101 : vector<16x128xf32>
    %cst_37 = arith.constant dense<0.000000e+00> : vector<128xf32>
    %107 = vector.multi_reduction <add>, %106, %cst_37 [0] : vector<16x128xf32> to vector<128xf32>
    %108 = vector.shape_cast %107 : vector<128xf32> to vector<1x128xf32>
    %cst_38 = arith.constant 1.600000e+01 : f32
    %109 = vector.broadcast %cst_38 : f32 to vector<1x128xf32>
    %110 = arith.divf %108, %109 : vector<1x128xf32>
    %111 = arith.mulf %105, %105 : vector<1x128xf32>
    %112 = arith.subf %110, %111 : vector<1x128xf32>
    %cst_39 = arith.constant 0.000000e+00 : f32
    %113 = vector.broadcast %cst_39 : f32 to vector<1x128xf32>
    %114 = arith.maximumf %112, %113 : vector<1x128xf32>
    %cst_40 = arith.constant 9.99999974E-6 : f32
    %115 = vector.broadcast %cst_40 : f32 to vector<1x128xf32>
    %116 = arith.addf %114, %115 : vector<1x128xf32>
    %117 = math.rsqrt %116 : vector<1x128xf32>
    %118 = arith.mulf %6, %117 : vector<1x128xf32>
    %119 = arith.mulf %105, %118 : vector<1x128xf32>
    %120 = arith.subf %7, %119 : vector<1x128xf32>
    %121 = vector.broadcast %118 : vector<1x128xf32> to vector<16x128xf32>
    %122 = arith.mulf %101, %121 : vector<16x128xf32>
    %123 = vector.broadcast %120 : vector<1x128xf32> to vector<16x128xf32>
    %124 = arith.addf %122, %123 : vector<16x128xf32>
    %cst_41 = arith.constant 5.000000e-01 : f32
    %125 = vector.broadcast %cst_41 : f32 to vector<16x128xf32>
    %126 = arith.mulf %125, %124 : vector<16x128xf32>
    %127 = math.tanh %126 : vector<16x128xf32>
    %cst_42 = arith.constant 5.000000e-01 : f32
    %128 = vector.broadcast %cst_42 : f32 to vector<16x128xf32>
    %129 = arith.mulf %128, %127 : vector<16x128xf32>
    %cst_43 = arith.constant 5.000000e-01 : f32
    %130 = vector.broadcast %cst_43 : f32 to vector<16x128xf32>
    %131 = arith.addf %129, %130 : vector<16x128xf32>
    %132 = vector.extract_strided_slice %5 {offsets = [64, 0], sizes = [16, 128], strides = [1, 1]} : vector<128x128xf32> to vector<16x128xf32>
    %cst_44 = arith.constant dense<0.000000e+00> : vector<128xf32>
    %133 = vector.multi_reduction <add>, %132, %cst_44 [0] : vector<16x128xf32> to vector<128xf32>
    %134 = vector.shape_cast %133 : vector<128xf32> to vector<1x128xf32>
    %cst_45 = arith.constant 1.600000e+01 : f32
    %135 = vector.broadcast %cst_45 : f32 to vector<1x128xf32>
    %136 = arith.divf %134, %135 : vector<1x128xf32>
    %137 = arith.mulf %132, %132 : vector<16x128xf32>
    %cst_46 = arith.constant dense<0.000000e+00> : vector<128xf32>
    %138 = vector.multi_reduction <add>, %137, %cst_46 [0] : vector<16x128xf32> to vector<128xf32>
    %139 = vector.shape_cast %138 : vector<128xf32> to vector<1x128xf32>
    %cst_47 = arith.constant 1.600000e+01 : f32
    %140 = vector.broadcast %cst_47 : f32 to vector<1x128xf32>
    %141 = arith.divf %139, %140 : vector<1x128xf32>
    %142 = arith.mulf %136, %136 : vector<1x128xf32>
    %143 = arith.subf %141, %142 : vector<1x128xf32>
    %cst_48 = arith.constant 0.000000e+00 : f32
    %144 = vector.broadcast %cst_48 : f32 to vector<1x128xf32>
    %145 = arith.maximumf %143, %144 : vector<1x128xf32>
    %cst_49 = arith.constant 9.99999974E-6 : f32
    %146 = vector.broadcast %cst_49 : f32 to vector<1x128xf32>
    %147 = arith.addf %145, %146 : vector<1x128xf32>
    %148 = math.rsqrt %147 : vector<1x128xf32>
    %149 = arith.mulf %6, %148 : vector<1x128xf32>
    %150 = arith.mulf %136, %149 : vector<1x128xf32>
    %151 = arith.subf %7, %150 : vector<1x128xf32>
    %152 = vector.broadcast %149 : vector<1x128xf32> to vector<16x128xf32>
    %153 = arith.mulf %132, %152 : vector<16x128xf32>
    %154 = vector.broadcast %151 : vector<1x128xf32> to vector<16x128xf32>
    %155 = arith.addf %153, %154 : vector<16x128xf32>
    %cst_50 = arith.constant 5.000000e-01 : f32
    %156 = vector.broadcast %cst_50 : f32 to vector<16x128xf32>
    %157 = arith.mulf %156, %155 : vector<16x128xf32>
    %158 = math.tanh %157 : vector<16x128xf32>
    %cst_51 = arith.constant 5.000000e-01 : f32
    %159 = vector.broadcast %cst_51 : f32 to vector<16x128xf32>
    %160 = arith.mulf %159, %158 : vector<16x128xf32>
    %cst_52 = arith.constant 5.000000e-01 : f32
    %161 = vector.broadcast %cst_52 : f32 to vector<16x128xf32>
    %162 = arith.addf %160, %161 : vector<16x128xf32>
    %163 = vector.extract_strided_slice %5 {offsets = [80, 0], sizes = [16, 128], strides = [1, 1]} : vector<128x128xf32> to vector<16x128xf32>
    %cst_53 = arith.constant dense<0.000000e+00> : vector<128xf32>
    %164 = vector.multi_reduction <add>, %163, %cst_53 [0] : vector<16x128xf32> to vector<128xf32>
    %165 = vector.shape_cast %164 : vector<128xf32> to vector<1x128xf32>
    %cst_54 = arith.constant 1.600000e+01 : f32
    %166 = vector.broadcast %cst_54 : f32 to vector<1x128xf32>
    %167 = arith.divf %165, %166 : vector<1x128xf32>
    %168 = arith.mulf %163, %163 : vector<16x128xf32>
    %cst_55 = arith.constant dense<0.000000e+00> : vector<128xf32>
    %169 = vector.multi_reduction <add>, %168, %cst_55 [0] : vector<16x128xf32> to vector<128xf32>
    %170 = vector.shape_cast %169 : vector<128xf32> to vector<1x128xf32>
    %cst_56 = arith.constant 1.600000e+01 : f32
    %171 = vector.broadcast %cst_56 : f32 to vector<1x128xf32>
    %172 = arith.divf %170, %171 : vector<1x128xf32>
    %173 = arith.mulf %167, %167 : vector<1x128xf32>
    %174 = arith.subf %172, %173 : vector<1x128xf32>
    %cst_57 = arith.constant 0.000000e+00 : f32
    %175 = vector.broadcast %cst_57 : f32 to vector<1x128xf32>
    %176 = arith.maximumf %174, %175 : vector<1x128xf32>
    %cst_58 = arith.constant 9.99999974E-6 : f32
    %177 = vector.broadcast %cst_58 : f32 to vector<1x128xf32>
    %178 = arith.addf %176, %177 : vector<1x128xf32>
    %179 = math.rsqrt %178 : vector<1x128xf32>
    %180 = arith.mulf %6, %179 : vector<1x128xf32>
    %181 = arith.mulf %167, %180 : vector<1x128xf32>
    %182 = arith.subf %7, %181 : vector<1x128xf32>
    %183 = vector.broadcast %180 : vector<1x128xf32> to vector<16x128xf32>
    %184 = arith.mulf %163, %183 : vector<16x128xf32>
    %185 = vector.broadcast %182 : vector<1x128xf32> to vector<16x128xf32>
    %186 = arith.addf %184, %185 : vector<16x128xf32>
    %cst_59 = arith.constant 5.000000e-01 : f32
    %187 = vector.broadcast %cst_59 : f32 to vector<16x128xf32>
    %188 = arith.mulf %187, %186 : vector<16x128xf32>
    %189 = math.tanh %188 : vector<16x128xf32>
    %cst_60 = arith.constant 5.000000e-01 : f32
    %190 = vector.broadcast %cst_60 : f32 to vector<16x128xf32>
    %191 = arith.mulf %190, %189 : vector<16x128xf32>
    %cst_61 = arith.constant 5.000000e-01 : f32
    %192 = vector.broadcast %cst_61 : f32 to vector<16x128xf32>
    %193 = arith.addf %191, %192 : vector<16x128xf32>
    %194 = vector.extract_strided_slice %5 {offsets = [96, 0], sizes = [16, 128], strides = [1, 1]} : vector<128x128xf32> to vector<16x128xf32>
    %cst_62 = arith.constant dense<0.000000e+00> : vector<128xf32>
    %195 = vector.multi_reduction <add>, %194, %cst_62 [0] : vector<16x128xf32> to vector<128xf32>
    %196 = vector.shape_cast %195 : vector<128xf32> to vector<1x128xf32>
    %cst_63 = arith.constant 1.600000e+01 : f32
    %197 = vector.broadcast %cst_63 : f32 to vector<1x128xf32>
    %198 = arith.divf %196, %197 : vector<1x128xf32>
    %199 = arith.mulf %194, %194 : vector<16x128xf32>
    %cst_64 = arith.constant dense<0.000000e+00> : vector<128xf32>
    %200 = vector.multi_reduction <add>, %199, %cst_64 [0] : vector<16x128xf32> to vector<128xf32>
    %201 = vector.shape_cast %200 : vector<128xf32> to vector<1x128xf32>
    %cst_65 = arith.constant 1.600000e+01 : f32
    %202 = vector.broadcast %cst_65 : f32 to vector<1x128xf32>
    %203 = arith.divf %201, %202 : vector<1x128xf32>
    %204 = arith.mulf %198, %198 : vector<1x128xf32>
    %205 = arith.subf %203, %204 : vector<1x128xf32>
    %cst_66 = arith.constant 0.000000e+00 : f32
    %206 = vector.broadcast %cst_66 : f32 to vector<1x128xf32>
    %207 = arith.maximumf %205, %206 : vector<1x128xf32>
    %cst_67 = arith.constant 9.99999974E-6 : f32
    %208 = vector.broadcast %cst_67 : f32 to vector<1x128xf32>
    %209 = arith.addf %207, %208 : vector<1x128xf32>
    %210 = math.rsqrt %209 : vector<1x128xf32>
    %211 = arith.mulf %6, %210 : vector<1x128xf32>
    %212 = arith.mulf %198, %211 : vector<1x128xf32>
    %213 = arith.subf %7, %212 : vector<1x128xf32>
    %214 = vector.broadcast %211 : vector<1x128xf32> to vector<16x128xf32>
    %215 = arith.mulf %194, %214 : vector<16x128xf32>
    %216 = vector.broadcast %213 : vector<1x128xf32> to vector<16x128xf32>
    %217 = arith.addf %215, %216 : vector<16x128xf32>
    %cst_68 = arith.constant 5.000000e-01 : f32
    %218 = vector.broadcast %cst_68 : f32 to vector<16x128xf32>
    %219 = arith.mulf %218, %217 : vector<16x128xf32>
    %220 = math.tanh %219 : vector<16x128xf32>
    %cst_69 = arith.constant 5.000000e-01 : f32
    %221 = vector.broadcast %cst_69 : f32 to vector<16x128xf32>
    %222 = arith.mulf %221, %220 : vector<16x128xf32>
    %cst_70 = arith.constant 5.000000e-01 : f32
    %223 = vector.broadcast %cst_70 : f32 to vector<16x128xf32>
    %224 = arith.addf %222, %223 : vector<16x128xf32>
    %225 = vector.extract_strided_slice %5 {offsets = [112, 0], sizes = [16, 128], strides = [1, 1]} : vector<128x128xf32> to vector<16x128xf32>
    %cst_71 = arith.constant dense<0.000000e+00> : vector<128xf32>
    %226 = vector.multi_reduction <add>, %225, %cst_71 [0] : vector<16x128xf32> to vector<128xf32>
    %227 = vector.shape_cast %226 : vector<128xf32> to vector<1x128xf32>
    %cst_72 = arith.constant 1.600000e+01 : f32
    %228 = vector.broadcast %cst_72 : f32 to vector<1x128xf32>
    %229 = arith.divf %227, %228 : vector<1x128xf32>
    %230 = arith.mulf %225, %225 : vector<16x128xf32>
    %cst_73 = arith.constant dense<0.000000e+00> : vector<128xf32>
    %231 = vector.multi_reduction <add>, %230, %cst_73 [0] : vector<16x128xf32> to vector<128xf32>
    %232 = vector.shape_cast %231 : vector<128xf32> to vector<1x128xf32>
    %cst_74 = arith.constant 1.600000e+01 : f32
    %233 = vector.broadcast %cst_74 : f32 to vector<1x128xf32>
    %234 = arith.divf %232, %233 : vector<1x128xf32>
    %235 = arith.mulf %229, %229 : vector<1x128xf32>
    %236 = arith.subf %234, %235 : vector<1x128xf32>
    %cst_75 = arith.constant 0.000000e+00 : f32
    %237 = vector.broadcast %cst_75 : f32 to vector<1x128xf32>
    %238 = arith.maximumf %236, %237 : vector<1x128xf32>
    %cst_76 = arith.constant 9.99999974E-6 : f32
    %239 = vector.broadcast %cst_76 : f32 to vector<1x128xf32>
    %240 = arith.addf %238, %239 : vector<1x128xf32>
    %241 = math.rsqrt %240 : vector<1x128xf32>
    %242 = arith.mulf %6, %241 : vector<1x128xf32>
    %243 = arith.mulf %229, %242 : vector<1x128xf32>
    %244 = arith.subf %7, %243 : vector<1x128xf32>
    %245 = vector.broadcast %242 : vector<1x128xf32> to vector<16x128xf32>
    %246 = arith.mulf %225, %245 : vector<16x128xf32>
    %247 = vector.broadcast %244 : vector<1x128xf32> to vector<16x128xf32>
    %248 = arith.addf %246, %247 : vector<16x128xf32>
    %cst_77 = arith.constant 5.000000e-01 : f32
    %249 = vector.broadcast %cst_77 : f32 to vector<16x128xf32>
    %250 = arith.mulf %249, %248 : vector<16x128xf32>
    %251 = math.tanh %250 : vector<16x128xf32>
    %cst_78 = arith.constant 5.000000e-01 : f32
    %252 = vector.broadcast %cst_78 : f32 to vector<16x128xf32>
    %253 = arith.mulf %252, %251 : vector<16x128xf32>
    %cst_79 = arith.constant 5.000000e-01 : f32
    %254 = vector.broadcast %cst_79 : f32 to vector<16x128xf32>
    %255 = arith.addf %253, %254 : vector<16x128xf32>
    %256 = tpu.concatenate %38, %69, %100, %131, %162, %193, %224, %255 in 0 : vector<16x128xf32>, vector<16x128xf32>, vector<16x128xf32>, vector<16x128xf32>, vector<16x128xf32>, vector<16x128xf32>, vector<16x128xf32>, vector<16x128xf32> -> vector<128x128xf32>
    %c1_80 = arith.constant 1 : index
    %c0_81 = arith.constant 0 : index
    %c0_82 = arith.constant 0 : index
    %257 = vector.load %arg2[%c1_80, %c0_81, %c0_82] : memref<3x128x128xf32, #tpu.memory_space<vmem>>, vector<1x128x128xf32>
    %258 = vector.shape_cast %257 : vector<1x128x128xf32> to vector<128x128xf32>
    %cst_83 = arith.constant dense<0.000000e+00> : vector<128x128xf32>
    %259 = tpu.matmul %256, %258, %cst_83 {dimension_numbers = #tpu.dot_dimension_numbers<[1], [0], [0], [1], [0, 0, 1, 1], [], []>} : vector<128x128xf32>, vector<128x128xf32>, vector<128x128xf32> -> vector<128x128xf32>
    %c2 = arith.constant 2 : index
    %c0_84 = arith.constant 0 : index
    %260 = vector.load %arg3[%c2, %c0_84] : memref<8x128xf32, #tpu.memory_space<vmem>>, vector<1x128xf32>
    %c3 = arith.constant 3 : index
    %c0_85 = arith.constant 0 : index
    %261 = vector.load %arg3[%c3, %c0_85] : memref<8x128xf32, #tpu.memory_space<vmem>>, vector<1x128xf32>
    %262 = vector.extract_strided_slice %259 {offsets = [0, 0], sizes = [16, 128], strides = [1, 1]} : vector<128x128xf32> to vector<16x128xf32>
    %cst_86 = arith.constant dense<0.000000e+00> : vector<128xf32>
    %263 = vector.multi_reduction <add>, %262, %cst_86 [0] : vector<16x128xf32> to vector<128xf32>
    %264 = vector.shape_cast %263 : vector<128xf32> to vector<1x128xf32>
    %cst_87 = arith.constant 1.600000e+01 : f32
    %265 = vector.broadcast %cst_87 : f32 to vector<1x128xf32>
    %266 = arith.divf %264, %265 : vector<1x128xf32>
    %267 = arith.mulf %262, %262 : vector<16x128xf32>
    %cst_88 = arith.constant dense<0.000000e+00> : vector<128xf32>
    %268 = vector.multi_reduction <add>, %267, %cst_88 [0] : vector<16x128xf32> to vector<128xf32>
    %269 = vector.shape_cast %268 : vector<128xf32> to vector<1x128xf32>
    %cst_89 = arith.constant 1.600000e+01 : f32
    %270 = vector.broadcast %cst_89 : f32 to vector<1x128xf32>
    %271 = arith.divf %269, %270 : vector<1x128xf32>
    %272 = arith.mulf %266, %266 : vector<1x128xf32>
    %273 = arith.subf %271, %272 : vector<1x128xf32>
    %cst_90 = arith.constant 0.000000e+00 : f32
    %274 = vector.broadcast %cst_90 : f32 to vector<1x128xf32>
    %275 = arith.maximumf %273, %274 : vector<1x128xf32>
    %cst_91 = arith.constant 9.99999974E-6 : f32
    %276 = vector.broadcast %cst_91 : f32 to vector<1x128xf32>
    %277 = arith.addf %275, %276 : vector<1x128xf32>
    %278 = math.rsqrt %277 : vector<1x128xf32>
    %279 = arith.mulf %260, %278 : vector<1x128xf32>
    %280 = arith.mulf %266, %279 : vector<1x128xf32>
    %281 = arith.subf %261, %280 : vector<1x128xf32>
    %282 = vector.broadcast %279 : vector<1x128xf32> to vector<16x128xf32>
    %283 = arith.mulf %262, %282 : vector<16x128xf32>
    %284 = vector.broadcast %281 : vector<1x128xf32> to vector<16x128xf32>
    %285 = arith.addf %283, %284 : vector<16x128xf32>
    %cst_92 = arith.constant 5.000000e-01 : f32
    %286 = vector.broadcast %cst_92 : f32 to vector<16x128xf32>
    %287 = arith.mulf %286, %285 : vector<16x128xf32>
    %288 = math.tanh %287 : vector<16x128xf32>
    %cst_93 = arith.constant 5.000000e-01 : f32
    %289 = vector.broadcast %cst_93 : f32 to vector<16x128xf32>
    %290 = arith.mulf %289, %288 : vector<16x128xf32>
    %cst_94 = arith.constant 5.000000e-01 : f32
    %291 = vector.broadcast %cst_94 : f32 to vector<16x128xf32>
    %292 = arith.addf %290, %291 : vector<16x128xf32>
    %293 = vector.extract_strided_slice %259 {offsets = [16, 0], sizes = [16, 128], strides = [1, 1]} : vector<128x128xf32> to vector<16x128xf32>
    %cst_95 = arith.constant dense<0.000000e+00> : vector<128xf32>
    %294 = vector.multi_reduction <add>, %293, %cst_95 [0] : vector<16x128xf32> to vector<128xf32>
    %295 = vector.shape_cast %294 : vector<128xf32> to vector<1x128xf32>
    %cst_96 = arith.constant 1.600000e+01 : f32
    %296 = vector.broadcast %cst_96 : f32 to vector<1x128xf32>
    %297 = arith.divf %295, %296 : vector<1x128xf32>
    %298 = arith.mulf %293, %293 : vector<16x128xf32>
    %cst_97 = arith.constant dense<0.000000e+00> : vector<128xf32>
    %299 = vector.multi_reduction <add>, %298, %cst_97 [0] : vector<16x128xf32> to vector<128xf32>
    %300 = vector.shape_cast %299 : vector<128xf32> to vector<1x128xf32>
    %cst_98 = arith.constant 1.600000e+01 : f32
    %301 = vector.broadcast %cst_98 : f32 to vector<1x128xf32>
    %302 = arith.divf %300, %301 : vector<1x128xf32>
    %303 = arith.mulf %297, %297 : vector<1x128xf32>
    %304 = arith.subf %302, %303 : vector<1x128xf32>
    %cst_99 = arith.constant 0.000000e+00 : f32
    %305 = vector.broadcast %cst_99 : f32 to vector<1x128xf32>
    %306 = arith.maximumf %304, %305 : vector<1x128xf32>
    %cst_100 = arith.constant 9.99999974E-6 : f32
    %307 = vector.broadcast %cst_100 : f32 to vector<1x128xf32>
    %308 = arith.addf %306, %307 : vector<1x128xf32>
    %309 = math.rsqrt %308 : vector<1x128xf32>
    %310 = arith.mulf %260, %309 : vector<1x128xf32>
    %311 = arith.mulf %297, %310 : vector<1x128xf32>
    %312 = arith.subf %261, %311 : vector<1x128xf32>
    %313 = vector.broadcast %310 : vector<1x128xf32> to vector<16x128xf32>
    %314 = arith.mulf %293, %313 : vector<16x128xf32>
    %315 = vector.broadcast %312 : vector<1x128xf32> to vector<16x128xf32>
    %316 = arith.addf %314, %315 : vector<16x128xf32>
    %cst_101 = arith.constant 5.000000e-01 : f32
    %317 = vector.broadcast %cst_101 : f32 to vector<16x128xf32>
    %318 = arith.mulf %317, %316 : vector<16x128xf32>
    %319 = math.tanh %318 : vector<16x128xf32>
    %cst_102 = arith.constant 5.000000e-01 : f32
    %320 = vector.broadcast %cst_102 : f32 to vector<16x128xf32>
    %321 = arith.mulf %320, %319 : vector<16x128xf32>
    %cst_103 = arith.constant 5.000000e-01 : f32
    %322 = vector.broadcast %cst_103 : f32 to vector<16x128xf32>
    %323 = arith.addf %321, %322 : vector<16x128xf32>
    %324 = vector.extract_strided_slice %259 {offsets = [32, 0], sizes = [16, 128], strides = [1, 1]} : vector<128x128xf32> to vector<16x128xf32>
    %cst_104 = arith.constant dense<0.000000e+00> : vector<128xf32>
    %325 = vector.multi_reduction <add>, %324, %cst_104 [0] : vector<16x128xf32> to vector<128xf32>
    %326 = vector.shape_cast %325 : vector<128xf32> to vector<1x128xf32>
    %cst_105 = arith.constant 1.600000e+01 : f32
    %327 = vector.broadcast %cst_105 : f32 to vector<1x128xf32>
    %328 = arith.divf %326, %327 : vector<1x128xf32>
    %329 = arith.mulf %324, %324 : vector<16x128xf32>
    %cst_106 = arith.constant dense<0.000000e+00> : vector<128xf32>
    %330 = vector.multi_reduction <add>, %329, %cst_106 [0] : vector<16x128xf32> to vector<128xf32>
    %331 = vector.shape_cast %330 : vector<128xf32> to vector<1x128xf32>
    %cst_107 = arith.constant 1.600000e+01 : f32
    %332 = vector.broadcast %cst_107 : f32 to vector<1x128xf32>
    %333 = arith.divf %331, %332 : vector<1x128xf32>
    %334 = arith.mulf %328, %328 : vector<1x128xf32>
    %335 = arith.subf %333, %334 : vector<1x128xf32>
    %cst_108 = arith.constant 0.000000e+00 : f32
    %336 = vector.broadcast %cst_108 : f32 to vector<1x128xf32>
    %337 = arith.maximumf %335, %336 : vector<1x128xf32>
    %cst_109 = arith.constant 9.99999974E-6 : f32
    %338 = vector.broadcast %cst_109 : f32 to vector<1x128xf32>
    %339 = arith.addf %337, %338 : vector<1x128xf32>
    %340 = math.rsqrt %339 : vector<1x128xf32>
    %341 = arith.mulf %260, %340 : vector<1x128xf32>
    %342 = arith.mulf %328, %341 : vector<1x128xf32>
    %343 = arith.subf %261, %342 : vector<1x128xf32>
    %344 = vector.broadcast %341 : vector<1x128xf32> to vector<16x128xf32>
    %345 = arith.mulf %324, %344 : vector<16x128xf32>
    %346 = vector.broadcast %343 : vector<1x128xf32> to vector<16x128xf32>
    %347 = arith.addf %345, %346 : vector<16x128xf32>
    %cst_110 = arith.constant 5.000000e-01 : f32
    %348 = vector.broadcast %cst_110 : f32 to vector<16x128xf32>
    %349 = arith.mulf %348, %347 : vector<16x128xf32>
    %350 = math.tanh %349 : vector<16x128xf32>
    %cst_111 = arith.constant 5.000000e-01 : f32
    %351 = vector.broadcast %cst_111 : f32 to vector<16x128xf32>
    %352 = arith.mulf %351, %350 : vector<16x128xf32>
    %cst_112 = arith.constant 5.000000e-01 : f32
    %353 = vector.broadcast %cst_112 : f32 to vector<16x128xf32>
    %354 = arith.addf %352, %353 : vector<16x128xf32>
    %355 = vector.extract_strided_slice %259 {offsets = [48, 0], sizes = [16, 128], strides = [1, 1]} : vector<128x128xf32> to vector<16x128xf32>
    %cst_113 = arith.constant dense<0.000000e+00> : vector<128xf32>
    %356 = vector.multi_reduction <add>, %355, %cst_113 [0] : vector<16x128xf32> to vector<128xf32>
    %357 = vector.shape_cast %356 : vector<128xf32> to vector<1x128xf32>
    %cst_114 = arith.constant 1.600000e+01 : f32
    %358 = vector.broadcast %cst_114 : f32 to vector<1x128xf32>
    %359 = arith.divf %357, %358 : vector<1x128xf32>
    %360 = arith.mulf %355, %355 : vector<16x128xf32>
    %cst_115 = arith.constant dense<0.000000e+00> : vector<128xf32>
    %361 = vector.multi_reduction <add>, %360, %cst_115 [0] : vector<16x128xf32> to vector<128xf32>
    %362 = vector.shape_cast %361 : vector<128xf32> to vector<1x128xf32>
    %cst_116 = arith.constant 1.600000e+01 : f32
    %363 = vector.broadcast %cst_116 : f32 to vector<1x128xf32>
    %364 = arith.divf %362, %363 : vector<1x128xf32>
    %365 = arith.mulf %359, %359 : vector<1x128xf32>
    %366 = arith.subf %364, %365 : vector<1x128xf32>
    %cst_117 = arith.constant 0.000000e+00 : f32
    %367 = vector.broadcast %cst_117 : f32 to vector<1x128xf32>
    %368 = arith.maximumf %366, %367 : vector<1x128xf32>
    %cst_118 = arith.constant 9.99999974E-6 : f32
    %369 = vector.broadcast %cst_118 : f32 to vector<1x128xf32>
    %370 = arith.addf %368, %369 : vector<1x128xf32>
    %371 = math.rsqrt %370 : vector<1x128xf32>
    %372 = arith.mulf %260, %371 : vector<1x128xf32>
    %373 = arith.mulf %359, %372 : vector<1x128xf32>
    %374 = arith.subf %261, %373 : vector<1x128xf32>
    %375 = vector.broadcast %372 : vector<1x128xf32> to vector<16x128xf32>
    %376 = arith.mulf %355, %375 : vector<16x128xf32>
    %377 = vector.broadcast %374 : vector<1x128xf32> to vector<16x128xf32>
    %378 = arith.addf %376, %377 : vector<16x128xf32>
    %cst_119 = arith.constant 5.000000e-01 : f32
    %379 = vector.broadcast %cst_119 : f32 to vector<16x128xf32>
    %380 = arith.mulf %379, %378 : vector<16x128xf32>
    %381 = math.tanh %380 : vector<16x128xf32>
    %cst_120 = arith.constant 5.000000e-01 : f32
    %382 = vector.broadcast %cst_120 : f32 to vector<16x128xf32>
    %383 = arith.mulf %382, %381 : vector<16x128xf32>
    %cst_121 = arith.constant 5.000000e-01 : f32
    %384 = vector.broadcast %cst_121 : f32 to vector<16x128xf32>
    %385 = arith.addf %383, %384 : vector<16x128xf32>
    %386 = vector.extract_strided_slice %259 {offsets = [64, 0], sizes = [16, 128], strides = [1, 1]} : vector<128x128xf32> to vector<16x128xf32>
    %cst_122 = arith.constant dense<0.000000e+00> : vector<128xf32>
    %387 = vector.multi_reduction <add>, %386, %cst_122 [0] : vector<16x128xf32> to vector<128xf32>
    %388 = vector.shape_cast %387 : vector<128xf32> to vector<1x128xf32>
    %cst_123 = arith.constant 1.600000e+01 : f32
    %389 = vector.broadcast %cst_123 : f32 to vector<1x128xf32>
    %390 = arith.divf %388, %389 : vector<1x128xf32>
    %391 = arith.mulf %386, %386 : vector<16x128xf32>
    %cst_124 = arith.constant dense<0.000000e+00> : vector<128xf32>
    %392 = vector.multi_reduction <add>, %391, %cst_124 [0] : vector<16x128xf32> to vector<128xf32>
    %393 = vector.shape_cast %392 : vector<128xf32> to vector<1x128xf32>
    %cst_125 = arith.constant 1.600000e+01 : f32
    %394 = vector.broadcast %cst_125 : f32 to vector<1x128xf32>
    %395 = arith.divf %393, %394 : vector<1x128xf32>
    %396 = arith.mulf %390, %390 : vector<1x128xf32>
    %397 = arith.subf %395, %396 : vector<1x128xf32>
    %cst_126 = arith.constant 0.000000e+00 : f32
    %398 = vector.broadcast %cst_126 : f32 to vector<1x128xf32>
    %399 = arith.maximumf %397, %398 : vector<1x128xf32>
    %cst_127 = arith.constant 9.99999974E-6 : f32
    %400 = vector.broadcast %cst_127 : f32 to vector<1x128xf32>
    %401 = arith.addf %399, %400 : vector<1x128xf32>
    %402 = math.rsqrt %401 : vector<1x128xf32>
    %403 = arith.mulf %260, %402 : vector<1x128xf32>
    %404 = arith.mulf %390, %403 : vector<1x128xf32>
    %405 = arith.subf %261, %404 : vector<1x128xf32>
    %406 = vector.broadcast %403 : vector<1x128xf32> to vector<16x128xf32>
    %407 = arith.mulf %386, %406 : vector<16x128xf32>
    %408 = vector.broadcast %405 : vector<1x128xf32> to vector<16x128xf32>
    %409 = arith.addf %407, %408 : vector<16x128xf32>
    %cst_128 = arith.constant 5.000000e-01 : f32
    %410 = vector.broadcast %cst_128 : f32 to vector<16x128xf32>
    %411 = arith.mulf %410, %409 : vector<16x128xf32>
    %412 = math.tanh %411 : vector<16x128xf32>
    %cst_129 = arith.constant 5.000000e-01 : f32
    %413 = vector.broadcast %cst_129 : f32 to vector<16x128xf32>
    %414 = arith.mulf %413, %412 : vector<16x128xf32>
    %cst_130 = arith.constant 5.000000e-01 : f32
    %415 = vector.broadcast %cst_130 : f32 to vector<16x128xf32>
    %416 = arith.addf %414, %415 : vector<16x128xf32>
    %417 = vector.extract_strided_slice %259 {offsets = [80, 0], sizes = [16, 128], strides = [1, 1]} : vector<128x128xf32> to vector<16x128xf32>
    %cst_131 = arith.constant dense<0.000000e+00> : vector<128xf32>
    %418 = vector.multi_reduction <add>, %417, %cst_131 [0] : vector<16x128xf32> to vector<128xf32>
    %419 = vector.shape_cast %418 : vector<128xf32> to vector<1x128xf32>
    %cst_132 = arith.constant 1.600000e+01 : f32
    %420 = vector.broadcast %cst_132 : f32 to vector<1x128xf32>
    %421 = arith.divf %419, %420 : vector<1x128xf32>
    %422 = arith.mulf %417, %417 : vector<16x128xf32>
    %cst_133 = arith.constant dense<0.000000e+00> : vector<128xf32>
    %423 = vector.multi_reduction <add>, %422, %cst_133 [0] : vector<16x128xf32> to vector<128xf32>
    %424 = vector.shape_cast %423 : vector<128xf32> to vector<1x128xf32>
    %cst_134 = arith.constant 1.600000e+01 : f32
    %425 = vector.broadcast %cst_134 : f32 to vector<1x128xf32>
    %426 = arith.divf %424, %425 : vector<1x128xf32>
    %427 = arith.mulf %421, %421 : vector<1x128xf32>
    %428 = arith.subf %426, %427 : vector<1x128xf32>
    %cst_135 = arith.constant 0.000000e+00 : f32
    %429 = vector.broadcast %cst_135 : f32 to vector<1x128xf32>
    %430 = arith.maximumf %428, %429 : vector<1x128xf32>
    %cst_136 = arith.constant 9.99999974E-6 : f32
    %431 = vector.broadcast %cst_136 : f32 to vector<1x128xf32>
    %432 = arith.addf %430, %431 : vector<1x128xf32>
    %433 = math.rsqrt %432 : vector<1x128xf32>
    %434 = arith.mulf %260, %433 : vector<1x128xf32>
    %435 = arith.mulf %421, %434 : vector<1x128xf32>
    %436 = arith.subf %261, %435 : vector<1x128xf32>
    %437 = vector.broadcast %434 : vector<1x128xf32> to vector<16x128xf32>
    %438 = arith.mulf %417, %437 : vector<16x128xf32>
    %439 = vector.broadcast %436 : vector<1x128xf32> to vector<16x128xf32>
    %440 = arith.addf %438, %439 : vector<16x128xf32>
    %cst_137 = arith.constant 5.000000e-01 : f32
    %441 = vector.broadcast %cst_137 : f32 to vector<16x128xf32>
    %442 = arith.mulf %441, %440 : vector<16x128xf32>
    %443 = math.tanh %442 : vector<16x128xf32>
    %cst_138 = arith.constant 5.000000e-01 : f32
    %444 = vector.broadcast %cst_138 : f32 to vector<16x128xf32>
    %445 = arith.mulf %444, %443 : vector<16x128xf32>
    %cst_139 = arith.constant 5.000000e-01 : f32
    %446 = vector.broadcast %cst_139 : f32 to vector<16x128xf32>
    %447 = arith.addf %445, %446 : vector<16x128xf32>
    %448 = vector.extract_strided_slice %259 {offsets = [96, 0], sizes = [16, 128], strides = [1, 1]} : vector<128x128xf32> to vector<16x128xf32>
    %cst_140 = arith.constant dense<0.000000e+00> : vector<128xf32>
    %449 = vector.multi_reduction <add>, %448, %cst_140 [0] : vector<16x128xf32> to vector<128xf32>
    %450 = vector.shape_cast %449 : vector<128xf32> to vector<1x128xf32>
    %cst_141 = arith.constant 1.600000e+01 : f32
    %451 = vector.broadcast %cst_141 : f32 to vector<1x128xf32>
    %452 = arith.divf %450, %451 : vector<1x128xf32>
    %453 = arith.mulf %448, %448 : vector<16x128xf32>
    %cst_142 = arith.constant dense<0.000000e+00> : vector<128xf32>
    %454 = vector.multi_reduction <add>, %453, %cst_142 [0] : vector<16x128xf32> to vector<128xf32>
    %455 = vector.shape_cast %454 : vector<128xf32> to vector<1x128xf32>
    %cst_143 = arith.constant 1.600000e+01 : f32
    %456 = vector.broadcast %cst_143 : f32 to vector<1x128xf32>
    %457 = arith.divf %455, %456 : vector<1x128xf32>
    %458 = arith.mulf %452, %452 : vector<1x128xf32>
    %459 = arith.subf %457, %458 : vector<1x128xf32>
    %cst_144 = arith.constant 0.000000e+00 : f32
    %460 = vector.broadcast %cst_144 : f32 to vector<1x128xf32>
    %461 = arith.maximumf %459, %460 : vector<1x128xf32>
    %cst_145 = arith.constant 9.99999974E-6 : f32
    %462 = vector.broadcast %cst_145 : f32 to vector<1x128xf32>
    %463 = arith.addf %461, %462 : vector<1x128xf32>
    %464 = math.rsqrt %463 : vector<1x128xf32>
    %465 = arith.mulf %260, %464 : vector<1x128xf32>
    %466 = arith.mulf %452, %465 : vector<1x128xf32>
    %467 = arith.subf %261, %466 : vector<1x128xf32>
    %468 = vector.broadcast %465 : vector<1x128xf32> to vector<16x128xf32>
    %469 = arith.mulf %448, %468 : vector<16x128xf32>
    %470 = vector.broadcast %467 : vector<1x128xf32> to vector<16x128xf32>
    %471 = arith.addf %469, %470 : vector<16x128xf32>
    %cst_146 = arith.constant 5.000000e-01 : f32
    %472 = vector.broadcast %cst_146 : f32 to vector<16x128xf32>
    %473 = arith.mulf %472, %471 : vector<16x128xf32>
    %474 = math.tanh %473 : vector<16x128xf32>
    %cst_147 = arith.constant 5.000000e-01 : f32
    %475 = vector.broadcast %cst_147 : f32 to vector<16x128xf32>
    %476 = arith.mulf %475, %474 : vector<16x128xf32>
    %cst_148 = arith.constant 5.000000e-01 : f32
    %477 = vector.broadcast %cst_148 : f32 to vector<16x128xf32>
    %478 = arith.addf %476, %477 : vector<16x128xf32>
    %479 = vector.extract_strided_slice %259 {offsets = [112, 0], sizes = [16, 128], strides = [1, 1]} : vector<128x128xf32> to vector<16x128xf32>
    %cst_149 = arith.constant dense<0.000000e+00> : vector<128xf32>
    %480 = vector.multi_reduction <add>, %479, %cst_149 [0] : vector<16x128xf32> to vector<128xf32>
    %481 = vector.shape_cast %480 : vector<128xf32> to vector<1x128xf32>
    %cst_150 = arith.constant 1.600000e+01 : f32
    %482 = vector.broadcast %cst_150 : f32 to vector<1x128xf32>
    %483 = arith.divf %481, %482 : vector<1x128xf32>
    %484 = arith.mulf %479, %479 : vector<16x128xf32>
    %cst_151 = arith.constant dense<0.000000e+00> : vector<128xf32>
    %485 = vector.multi_reduction <add>, %484, %cst_151 [0] : vector<16x128xf32> to vector<128xf32>
    %486 = vector.shape_cast %485 : vector<128xf32> to vector<1x128xf32>
    %cst_152 = arith.constant 1.600000e+01 : f32
    %487 = vector.broadcast %cst_152 : f32 to vector<1x128xf32>
    %488 = arith.divf %486, %487 : vector<1x128xf32>
    %489 = arith.mulf %483, %483 : vector<1x128xf32>
    %490 = arith.subf %488, %489 : vector<1x128xf32>
    %cst_153 = arith.constant 0.000000e+00 : f32
    %491 = vector.broadcast %cst_153 : f32 to vector<1x128xf32>
    %492 = arith.maximumf %490, %491 : vector<1x128xf32>
    %cst_154 = arith.constant 9.99999974E-6 : f32
    %493 = vector.broadcast %cst_154 : f32 to vector<1x128xf32>
    %494 = arith.addf %492, %493 : vector<1x128xf32>
    %495 = math.rsqrt %494 : vector<1x128xf32>
    %496 = arith.mulf %260, %495 : vector<1x128xf32>
    %497 = arith.mulf %483, %496 : vector<1x128xf32>
    %498 = arith.subf %261, %497 : vector<1x128xf32>
    %499 = vector.broadcast %496 : vector<1x128xf32> to vector<16x128xf32>
    %500 = arith.mulf %479, %499 : vector<16x128xf32>
    %501 = vector.broadcast %498 : vector<1x128xf32> to vector<16x128xf32>
    %502 = arith.addf %500, %501 : vector<16x128xf32>
    %cst_155 = arith.constant 5.000000e-01 : f32
    %503 = vector.broadcast %cst_155 : f32 to vector<16x128xf32>
    %504 = arith.mulf %503, %502 : vector<16x128xf32>
    %505 = math.tanh %504 : vector<16x128xf32>
    %cst_156 = arith.constant 5.000000e-01 : f32
    %506 = vector.broadcast %cst_156 : f32 to vector<16x128xf32>
    %507 = arith.mulf %506, %505 : vector<16x128xf32>
    %cst_157 = arith.constant 5.000000e-01 : f32
    %508 = vector.broadcast %cst_157 : f32 to vector<16x128xf32>
    %509 = arith.addf %507, %508 : vector<16x128xf32>
    %510 = tpu.concatenate %292, %323, %354, %385, %416, %447, %478, %509 in 0 : vector<16x128xf32>, vector<16x128xf32>, vector<16x128xf32>, vector<16x128xf32>, vector<16x128xf32>, vector<16x128xf32>, vector<16x128xf32>, vector<16x128xf32> -> vector<128x128xf32>
    %c2_158 = arith.constant 2 : index
    %c0_159 = arith.constant 0 : index
    %c0_160 = arith.constant 0 : index
    %511 = vector.load %arg2[%c2_158, %c0_159, %c0_160] : memref<3x128x128xf32, #tpu.memory_space<vmem>>, vector<1x128x128xf32>
    %512 = vector.shape_cast %511 : vector<1x128x128xf32> to vector<128x128xf32>
    %c4 = arith.constant 4 : index
    %c0_161 = arith.constant 0 : index
    %513 = vector.load %arg3[%c4, %c0_161] : memref<8x128xf32, #tpu.memory_space<vmem>>, vector<1x128xf32>
    %cst_162 = arith.constant dense<0.000000e+00> : vector<128x128xf32>
    %514 = tpu.matmul %510, %512, %cst_162 {dimension_numbers = #tpu.dot_dimension_numbers<[1], [0], [0], [1], [0, 0, 1, 1], [], []>} : vector<128x128xf32>, vector<128x128xf32>, vector<128x128xf32> -> vector<128x128xf32>
    %515 = vector.broadcast %513 : vector<1x128xf32> to vector<128x128xf32>
    %516 = arith.addf %514, %515 : vector<128x128xf32>
    %c0_163 = arith.constant 0 : index
    %c0_164 = arith.constant 0 : index
    %c0_165 = arith.constant 0 : index
    %517 = vector.load %arg4[%c0_163, %c0_164, %c0_165] : memref<1x128x128xf32, #tpu.memory_space<vmem>>, vector<1x128x128xf32>
    %518 = vector.shape_cast %517 : vector<1x128x128xf32> to vector<128x128xf32>
    %519 = vector.shape_cast %516 : vector<128x128xf32> to vector<1x128x128xf32>
    tpu.vector_store %arg4[%c0_163, %c0_164, %c0_165], %519 {strides = array<i32>} : memref<1x128x128xf32, #tpu.memory_space<vmem>>, vector<1x128x128xf32>,
    return
  }
  func.func @transform_0(%arg0: i32) -> (i32, i32, i32) {
    %c0_i32 = arith.constant 0 : i32
    %c0_i32_0 = arith.constant 0 : i32
    %c0_i32_1 = arith.constant 0 : i32
    return %arg0, %c0_i32, %c0_i32_0 : i32, i32, i32
  }
  func.func @transform_1(%arg0: i32) -> (i32, i32, i32) {
    %c0_i32 = arith.constant 0 : i32
    %c0_i32_0 = arith.constant 0 : i32
    %c0_i32_1 = arith.constant 0 : i32
    %c0_i32_2 = arith.constant 0 : i32
    return %c0_i32, %c0_i32_0, %c0_i32_1 : i32, i32, i32
  }
  func.func @transform_2(%arg0: i32) -> (i32, i32) {
    %c0_i32 = arith.constant 0 : i32
    %c0_i32_0 = arith.constant 0 : i32
    %c0_i32_1 = arith.constant 0 : i32
    return %c0_i32, %c0_i32_0 : i32, i32
  }
  func.func @transform_3(%arg0: i32) -> (i32, i32, i32) {
    %c0_i32 = arith.constant 0 : i32
    %c0_i32_0 = arith.constant 0 : i32
    %c0_i32_1 = arith.constant 0 : i32
    return %arg0, %c0_i32, %c0_i32_0 : i32, i32, i32
  }
}

</mosaic_0001>

<bundles_post_ra>
// kernel: net_forward.1
= control target key start
LH: loop header
LB: loop body
LE: loop exit
PB: predicated region body
PF: predicated region fallthrough
CT: control target
= control target key end

     0   :  { %8 = vsyncpa [#allocation3], 0  ;;  %s2746_s0 = inlined_call_operand.hbm [shape: f32[2,128,32], index: 0, kind: input, shape index: {}]   ;;  %s2747_s1 = inlined_call_operand.hbm [shape: f32[3,128,128], index: 1, kind: input, shape index: {}]   ;;  %s2748_s2 = inlined_call_operand.hbm [shape: f32[8,128], index: 2, kind: input, shape index: {}]   ;;  %s2749_s3 = inlined_call_operand.vmem [shape: f32[2,128,128], index: 3, kind: output, shape index: {}]  }
   0x1   :  { %10 = vsyncpa [#allocation3 + $0x1], 0 }
   0x2   :  { %11 = vsyncpa [#allocation5], 0  ;;  %s2202_s12 = smov 0   ;;  %s2204_s13 = smov 0  }
   0x3   :  { %s2206_s14 = smov 0   ;;  %s2208_s15 = smov 0  }
   0x4 LB: > { %s2221_s16 = sadd.s32 4294967295, %s2175_s15   ;;  %p37_p0 = scmp.ne.s32.totalorder %s2167_s13, %s2163_s12  ;;  %s2175_s15 = sphi %s2208_s15, %s2764_s15   ;;  %s2171_s14 = sphi %s2206_s14, %s2763_s14   ;;  %s2167_s13 = sphi %s2204_s13, %s2762_s13   ;;  %s2163_s12 = sphi %s2202_s12, %s2761_s12  }
   0x5   : > { %p2750_p1 = scmp.eq.s32.totalorder %s2221_s16, 0  ;;  %p1605_p2 = scmp.ge.s32.totalorder %s2175_s15, 1 }
   0x6   : > { %p116_p3 = scmp.lt.s32.totalorder %s2175_s15, 3  ;;  %s2177_s19 = smov [#allocation4]  }
   0x7   : > { %p2229_p4 = por %p2750_p1, %p37_p0  ;;  %s128_s20 = sshll.u32 %s2177_s19, 4  ;;  %s129_s20 = int_to_ptr.vmem [resolvable:$true] %s128_s20 }
   0x8   : > { %p2233_p5 = pnand %p1605_p2, %p116_p3  ;;  %s2178_s22 = smov [#allocation6]  }
   0x9   : > { %s2753_s17 = scalar_select %p2229_p4, 1, 0 }
   0xa   : > { %s2754_s18 = scalar_select %p2233_p5, 1, 0 }
   0xb   : > { %p1909_p6 = pneg %p2233_p5  ;;  %s142_s23 = sshll.u32 %s2178_s22, 4  ;;  %s143_s23 = int_to_ptr.vmem [resolvable:$true] %s142_s23 }
   0xc   : > { %s2068_s24 = scalar_lea.vmem %s129_s20, 6144  ;;  %p2076_p12 = scmp.lt.s32.totalorder %s129_s20, %s129_s20 }
   0xd   : > { %p2241_p7 = pnand %p1909_p6, %p2750_p1  ;;  %p2069_p9 = scmp.ne.s32.totalorder %s129_s20, %s2068_s24 }
   0xe   : > { %p2077_p13 = scmp.lt.s32.totalorder %s2068_s24, %s2068_s24 }
   0xf   : > { %p2059_p8 = pneg %p2241_p7 }
  0x10   : > { %p2078_p0 = por %p2077_p13, %p2076_p12 }
  0x11   : > { %p2071_p10 = pnand %p2069_p9, %p2059_p8 }
  0x13   : > { %p2072_p11 = pneg %p2071_p10 }
  0x15   : > { %p2079_p2 = pnand %p2078_p0, %p2072_p11 }
  0x17   : > { %2082 = shalt.err (!%p2079_p2)
}
  0x18   : > { %s2179_s25 = smov 128   ;;  %s2180_s26 = smov 8  }
  0x19   : > { %1912 = dma.hbm_to_vmem [thread:$0]  (!%p2241_p7), %s2747_s1, 6144, %s129_s20, [#allocation5], %s2179_s25, %s2179_s25, %s2180_s26  }
  0x1a   : > { %s2094_s29 = scalar_lea.vmem %s143_s23, 128  ;;  %p2102_p10 = scmp.lt.s32.totalorder %s143_s23, %s143_s23 }
  0x1b   : > { %p2095_p3 = scmp.ne.s32.totalorder %s143_s23, %s2094_s29  ;;  %p2103_p11 = scmp.lt.s32.totalorder %s2094_s29, %s2094_s29 }
  0x1d   : > { %p2097_p6 = pnand %p2095_p3, %p2059_p8  ;;  %p2104_p12 = por %p2103_p11, %p2102_p10 }
  0x1f   : > { %p2098_p9 = pneg %p2097_p6 }
  0x21   : > { %p2105_p13 = pnand %p2104_p12, %p2098_p9 }
  0x23   : > { %2108 = shalt.err (!%p2105_p13)
}
  0x24   : > { %1915 = dma.hbm_to_vmem [thread:$0]  (!%p2241_p7), %s2748_s2, 128, %s143_s23, [#allocation5]  }
  0x25   : > { %s2267_s5 = sadd.s32 1, %s2175_s15   ;;  %s24_s6 = sadd.s32 1, %s2171_s14 }
  0x26   : > { %s21_s7 = ssub.s32 %s2175_s15, %s2267_s5  ;;  %p31_p8 = scmp.ne.s32.totalorder %s2171_s14, %s2167_s13 }
  0x27   : > { %p22_p0 = scmp.eq.s32.totalorder %s21_s7, 0  ;;  %p32_p2 = scmp.eq.s32.totalorder %s2175_s15, 0 }
  0x28   : > { %p1922_p3 = scmp.lt.s32.totalorder %s2175_s15, 2  ;;  %s153_s8 = sand.u32 1, %s2171_s14  }
  0x29   : > { %s2278_s9 = scalar_select %p22_p0, %s2171_s14, %s24_s6  }
  0x2a   : > { %p33_p6 = por %p32_p2, %p31_p8  ;;  %s1609_s10 = sshll.u32 %s153_s8, 7 }
  0x2b   : > { %s1637_s11 = sshll.u32 %s2175_s15, 11  ;;  %s157_s21 = scalar_lea.vmem [#allocation2], %s1609_s10 }
  0x2c   : > { %s2284_s20 = scalar_lea.hbm %s2746_s0, %s1637_s11  ;;  %s164_s22 = sshll.u32 %s157_s21, 4  ;;  %s2290_s22 = int_to_ptr.vmem [resolvable:$true] %s164_s22 }
  0x2d   : > { %p2286_p7 = pnand %p1922_p3, %p33_p6  ;;  %s2292_s24 = scalar_lea.sflag [#allocation3], %s153_s8 }
  0x2e   : > { %s2109_s15 = scalar_lea.hbm %s2284_s20, 2048  ;;  %s2114_s29 = scalar_lea.hbm %s2746_s0, 4096 }
  0x2f   : > { %p2110_p9 = scmp.ne.s32.totalorder %s2284_s20, %s2109_s15  ;;  %p2111_p10 = pneg %p2286_p7 }
  0x30   : > { %p2115_p13 = scmp.lt.s32.totalorder %s2284_s20, %s2746_s0  ;;  %p2116_p8 = scmp.lt.s32.totalorder %s2114_s29, %s2109_s15 }
  0x31   : > { %p2112_p11 = pnand %p2111_p10, %p2110_p9 }
  0x32   : > { %p2117_p0 = por %p2116_p8, %p2115_p13 }
  0x33   : > { %p2113_p12 = pneg %p2112_p11 }
  0x35   : > { %p2118_p2 = pnand %p2117_p0, %p2113_p12 }
  0x37   : > { %2121 = shalt.err (!%p2118_p2)
}
  0x38   : > { %s2122_s6 = scalar_lea.vmem %s2290_s22, 2048  ;;  %s2181_s7 = smov [#allocation2]  }
  0x39   : > { %p2123_p3 = scmp.ne.s32.totalorder %s2290_s22, %s2122_s6  ;;  %s2127_s8 = sshll.u32 %s2181_s7, 4  ;;  %s2128_s8 = int_to_ptr.vmem [resolvable:$false] %s2127_s8 }
  0x3a   : > { %s2129_s10 = scalar_lea.vmem %s2128_s8, 4096  ;;  %p2130_p11 = scmp.lt.s32.totalorder %s2290_s22, %s2128_s8 }
  0x3b   : > { %p2125_p6 = pnand %p2123_p3, %p2111_p10  ;;  %p2131_p1 = scmp.lt.s32.totalorder %s2129_s10, %s2122_s6 }
  0x3d   : > { %p2126_p9 = pneg %p2125_p6  ;;  %p2132_p4 = por %p2131_p1, %p2130_p11 }
  0x3f   : > { %p2133_p5 = pnand %p2132_p4, %p2126_p9 }
  0x41   : > { %2136 = shalt.err (!%p2133_p5)
}
  0x42   : > { %1919 = dma.hbm_to_vmem [thread:$0]  (!%p2286_p7), %s2284_s20, 2048, %s2290_s22, %s2292_s24, %s2179_s25, %s2179_s25, %s2180_s26  }
  0x43   : > { %p2757_p10 = scmp.ne.s32.totalorder %s2754_s18, 0 }
  0x44   : > { %s178_s11 = sand.u32 (!%p2757_p10), 1, %s2167_s13   ;;  %p2758_p1 = scmp.ne.s32.totalorder (!%p2757_p10), %s2753_s17, 0 }
  0x45   : > { %176 = sbr.rel (%p2757_p10) target bundleno = 874 (0x36a), region = 32  ;;  %s1613_s12 = sshll.u32 (!%p2757_p10), %s178_s11, 7 }
  0x46   : > { %s179_s19 = scalar_lea.sflag (!%p2757_p10), [#allocation3], %s178_s11  ;;  %s2319_s21 = scalar_lea.vmem (!%p2757_p10), [#allocation2], %s1613_s12 }
  0x4a   : > { %2154 = dma.done.wait (%p2758_p1), %s179_s19, 2048  }
  0x4b   : > { %2156 = vsyncadd (%p2758_p1), %s179_s19, 4294965248  ;;  %p2759_p4 = scmp.eq.s32.totalorder %s2221_s16, 0 }
  0x4d   : > { %2158 = dma.done.wait (%p2759_p4), [#allocation5], 6272   ;;  %p2760_p5 = pmov %p2759_p4 }
  0x4e   : > { %vm238_vm0 = vcmask 261120   ;;  %v221_v0 = vld [vmem:[#allocation4 + $0x18] sm:$0xff]  ;;  %v220_v1 = vld [vmem:[#allocation4 + $0x10] sm:$0xff]  ;;  %v222_v2 = vld [vmem:[%s2319_s21] sm:$0xff]  ;;  %v461_v44 = vlaneseq  ;;  %p213_p7 = scmp.lt.s32.totalorder %s2221_s16, 1 }
  0x4f   : > { %2160 = vsyncadd (%p2760_p5), [#allocation5], 4294961024  ;;  %1723 = vmatprep.subr.mxu0 %v221_v0  ;;  %v219_v3 = vld [vmem:[#allocation4 + $0x8] sm:$0xff]  ;;  %1731 = vmatprep.mubr.msk.f32.mxu0 %vm238_vm0, %v222_v2  ;;  %v218_v4 = vld [vmem:[#allocation4] sm:$0xff] }
  0x50   : > { %1724 = vmatpush3.msra.mxu0 %v221_v0  ;;  %v223_v5 = vld [vmem:[%s2319_s21 + $0x8] sm:$0xff]  ;;  %v224_v6 = vld [vmem:[%s2319_s21 + $0x10] sm:$0xff]  ;;  %v225_v7 = vld [vmem:[%s2319_s21 + $0x18] sm:$0xff]  ;;  %v462_v56 = vshrl.u32 %v461_v44, 7  ;;  %s2766_s16 = smov (!%p213_p7, %s2221_s16), 1 }
  0x51   : > { %1725 = vmatprep.subr.mxu0 %v220_v1  ;;  %v226_v8 = vld [vmem:[%s2319_s21 + $0x20] sm:$0xff]  ;;  %v227_v9 = vld [vmem:[%s2319_s21 + $0x28] sm:$0xff]  ;;  %v228_v10 = vld [vmem:[%s2319_s21 + $0x30] sm:$0xff]  ;;  %s1638_s17 = sshll.u32 %s2766_s16, 7 }
  0x52   : > { %1726 = vmatpush3.msra.mxu0 %v220_v1  ;;  %v229_v11 = vld [vmem:[%s2319_s21 + $0x38] sm:$0xff]  ;;  %v230_v12 = vld [vmem:[%s2319_s21 + $0x40] sm:$0xff]  ;;  %v231_v13 = vld [vmem:[%s2319_s21 + $0x48] sm:$0xff]  ;;  %s2715_s26 = scalar_lea.vmem %s2749_s3, %s1638_s17 }
  0x53   : > { %1727 = vmatprep.subr.mxu0 %v219_v3  ;;  %v232_v14 = vld [vmem:[%s2319_s21 + $0x50] sm:$0xff]  ;;  %v233_v15 = vld [vmem:[%s2319_s21 + $0x58] sm:$0xff]  ;;  %v234_v16 = vld [vmem:[%s2319_s21 + $0x60] sm:$0xff] }
  0x54   : > { %1728 = vmatpush3.msra.mxu0 %v219_v3  ;;  %v235_v17 = vld [vmem:[%s2319_s21 + $0x68] sm:$0xff]  ;;  %v236_v18 = vld [vmem:[%s2319_s21 + $0x70] sm:$0xff]  ;;  %v237_v19 = vld [vmem:[%s2319_s21 + $0x78] sm:$0xff] }
  0x55   : > { %1729 = vmatprep.subr.mxu0 %v218_v4  ;;  %v819_v20 = vld [vmem:[#allocation4 + $0xf8] sm:$0xff]  ;;  %v818_v21 = vld [vmem:[#allocation4 + $0xf0] sm:$0xff]  ;;  %v817_v22 = vld [vmem:[#allocation4 + $0xe8] sm:$0xff] }
  0x56   : > { %1730 = vmatpush3.msra.mxu0 %v218_v4  ;;  %1755 = vmatprep.subr.mxu1 %v819_v20  ;;  %v816_v23 = vld [vmem:[#allocation4 + $0xe0] sm:$0xff]  ;;  %v815_v24 = vld [vmem:[#allocation4 + $0xd8] sm:$0xff]  ;;  %v814_v25 = vld [vmem:[#allocation4 + $0xd0] sm:$0xff] }
  0x57   : > { %1732 = vmatmul.mubr.msk.f32.vlgmr.msra.gmra.mxu0 %vm238_vm0, %v223_v5  ;;  %1756 = vmatpush3.msra.mxu1 %v819_v20  ;;  %v813_v26 = vld [vmem:[#allocation4 + $0xc8] sm:$0xff]  ;;  %v812_v27 = vld [vmem:[#allocation4 + $0xc0] sm:$0xff]  ;;  %v811_v28 = vld [vmem:[#allocation4 + $0xb8] sm:$0xff] }
  0x58   : > { %1734 = vmatprep.mubr.msk.f32.mxu0 %vm238_vm0, %v224_v6  ;;  %1757 = vmatprep.subr.mxu1 %v818_v21  ;;  %v810_v29 = vld [vmem:[#allocation4 + $0xb0] sm:$0xff]  ;;  %v809_v30 = vld [vmem:[#allocation4 + $0xa8] sm:$0xff]  ;;  %v808_v31 = vld [vmem:[#allocation4 + $0xa0] sm:$0xff]  ;;  %v2393_v6 = vsub.s32 0, %v462_v56 }
  0x59   : > { %1758 = vmatpush3.msra.mxu1 %v818_v21  ;;  %v807_v32 = vld [vmem:[#allocation4 + $0x98] sm:$0xff]  ;;  %v806_v33 = vld [vmem:[#allocation4 + $0x90] sm:$0xff]  ;;  %v805_v34 = vld [vmem:[#allocation4 + $0x88] sm:$0xff] }
  0x5a   : > { %1759 = vmatprep.subr.mxu1 %v817_v22  ;;  %v804_v35 = vld [vmem:[#allocation4 + $0x80] sm:$0xff] }
  0x5b   : > { %1735 = vmatmul.mubr.msk.f32.gmra.mxu0 %vm238_vm0, %v225_v7  ;;  %1760 = vmatpush3.msra.mxu1 %v817_v22 }
  0x5c   : > { %1737 = vmatprep.mubr.msk.f32.mxu0 %vm238_vm0, %v226_v8  ;;  %1761 = vmatprep.subr.mxu1 %v816_v23 }
  0x5d   : > { %1762 = vmatpush3.msra.mxu1 %v816_v23 }
  0x5e   : > { %1763 = vmatprep.subr.mxu1 %v815_v24 }
  0x5f   : > { %1738 = vmatmul.mubr.msk.f32.gmra.mxu0 %vm238_vm0, %v227_v9  ;;  %1764 = vmatpush3.msra.mxu1 %v815_v24 }
  0x60   : > { %1740 = vmatprep.mubr.msk.f32.mxu0 %vm238_vm0, %v228_v10  ;;  %1765 = vmatprep.subr.mxu1 %v814_v25 }
  0x61   : > { %1766 = vmatpush3.msra.mxu1 %v814_v25 }
  0x62   : > { %1767 = vmatprep.subr.mxu1 %v813_v26 }
  0x63   : > { %1741 = vmatmul.mubr.msk.f32.gmra.mxu0 %vm238_vm0, %v229_v11  ;;  %1768 = vmatpush3.msra.mxu1 %v813_v26 }
  0x64   : > { %1743 = vmatprep.mubr.msk.f32.mxu0 %vm238_vm0, %v230_v12  ;;  %1769 = vmatprep.subr.mxu1 %v812_v27 }
  0x65   : > { %1770 = vmatpush3.msra.mxu1 %v812_v27 }
  0x66   : > { %1771 = vmatprep.subr.mxu1 %v811_v28 }
  0x67   : > { %1744 = vmatmul.mubr.msk.f32.gmra.mxu0 %vm238_vm0, %v231_v13  ;;  %1772 = vmatpush3.msra.mxu1 %v811_v28 }
  0x68   : > { %1746 = vmatprep.mubr.msk.f32.mxu0 %vm238_vm0, %v232_v14  ;;  %1773 = vmatprep.subr.mxu1 %v810_v29 }
  0x69   : > { %1774 = vmatpush3.msra.mxu1 %v810_v29 }
  0x6a   : > { %1775 = vmatprep.subr.mxu1 %v809_v30 }
  0x6b   : > { %1747 = vmatmul.mubr.msk.f32.gmra.mxu0 %vm238_vm0, %v233_v15  ;;  %1776 = vmatpush3.msra.mxu1 %v809_v30 }
  0x6c   : > { %1749 = vmatprep.mubr.msk.f32.mxu0 %vm238_vm0, %v234_v16  ;;  %1777 = vmatprep.subr.mxu1 %v808_v31 }
  0x6d   : > { %1778 = vmatpush3.msra.mxu1 %v808_v31 }
  0x6e   : > { %1779 = vmatprep.subr.mxu1 %v807_v32 }
  0x6f   : > { %1750 = vmatmul.mubr.msk.f32.gmra.mxu0 %vm238_vm0, %v235_v17  ;;  %1780 = vmatpush3.msra.mxu1 %v807_v32 }
  0x70   : > { %1752 = vmatprep.mubr.msk.f32.mxu0 %vm238_vm0, %v236_v18  ;;  %1781 = vmatprep.subr.mxu1 %v806_v33 }
  0x71   : > { %1782 = vmatpush3.msra.mxu1 %v806_v33 }
  0x72   : > { %1783 = vmatprep.subr.mxu1 %v805_v34 }
  0x73   : > { %1753 = vmatmul.mubr.msk.f32.gmra.mxu0 %vm238_vm0, %v237_v19  ;;  %1784 = vmatpush3.msra.mxu1 %v805_v34 }
  0x74   : > { %1785 = vmatprep.subr.mxu1 %v804_v35 }
  0x75   : > { %1786 = vmatpush3.msra.mxu1 %v804_v35 }
 0x117   : > { %v2361_v36 = vpop.f32.mrf.mxu0 }
 0x118   : > { %v444_v38 = vmul.f32 %v2361_v36, %v2361_v36 }
 0x119   : > { %v2363_v37 = vpop.f32.mrf.mxu0 }
 0x11a   : > { %v434_v39 = vadd.f32 %v2361_v36, %v2363_v37  ;;  %v443_v40 = vmul.f32 %v2363_v37, %v2363_v37 }
 0x11b   : > { %v2371_v41 = vpop.f32.mrf.mxu0 }
 0x11c   : > { %v435_v42 = vrot.slane %v434_v39, 4  ;;  %v445_v43 = vadd.f32 %v444_v38, %v443_v40  ;;  %v490_v45 = vmul.f32 %v2371_v41, %v2371_v41 }
 0x11d   : > { %v2375_v46 = vpop.f32.mrf.mxu0 }
 0x11e   : > { %v436_v47 = vadd.f32 %v435_v42, %v434_v39  ;;  %v446_v48 = vrot.slane %v445_v43, 4  ;;  %v481_v49 = vadd.f32 %v2371_v41, %v2375_v46  ;;  %v489_v50 = vmul.f32 %v2375_v46, %v2375_v46 }
 0x11f   : > { %v2381_v51 = vpop.f32.mrf.mxu0 }
 0x120   : > { %v437_v52 = vrot.slane %v436_v47, 2  ;;  %v447_v53 = vadd.f32 %v446_v48, %v445_v43  ;;  %v482_v54 = vrot.slane %v481_v49, 4  ;;  %v491_v55 = vadd.f32 %v490_v45, %v489_v50 }
 0x121   : > { %v2383_v57 = vpop.f32.mrf.mxu0  ;;  %v536_v62 = vmul.f32 %v2381_v51, %v2381_v51 }
 0x122   : > { %v438_v58 = vadd.f32 %v437_v52, %v436_v47  ;;  %v448_v59 = vrot.slane %v447_v53, 2  ;;  %v483_v60 = vadd.f32 %v482_v54, %v481_v49  ;;  %v492_v61 = vrot.slane %v491_v55, 4 }
 0x123   : > { %v527_v63 = vadd.f32 %v2381_v51, %v2383_v57  ;;  %v535_v0 = vmul.f32 %v2383_v57, %v2383_v57  ;;  %v2391_v1 = vpop.f32.mrf.mxu0 }
 0x124   : > { %v439_v2 = vrot.slane %v438_v58, 1  ;;  %v449_v3 = vadd.f32 %v448_v59, %v447_v53  ;;  %v484_v4 = vrot.slane %v483_v60, 2  ;;  %v493_v5 = vadd.f32 %v492_v61, %v491_v55 }
 0x125   : > { %v528_v7 = vrot.slane %v527_v63, 4  ;;  %v537_v8 = vadd.f32 %v536_v62, %v535_v0  ;;  %v582_v9 = vmul.f32 %v2391_v1, %v2391_v1  ;;  %v2397_v10 = vpop.f32.mrf.mxu0 }
 0x126   : > { %v440_v11 = vadd.f32 %v439_v2, %v438_v58  ;;  %v450_v12 = vrot.slane %v449_v3, 1  ;;  %v485_v13 = vadd.f32 %v484_v4, %v483_v60  ;;  %v494_v14 = vrot.slane %v493_v5, 2 }
 0x127   : > { %v529_v15 = vadd.f32 %v528_v7, %v527_v63  ;;  %v538_v16 = vrot.slane %v537_v8, 4  ;;  %v573_v17 = vadd.f32 %v2391_v1, %v2397_v10  ;;  %v581_v18 = vmul.f32 %v2397_v10, %v2397_v10  ;;  %v2403_v19 = vpop.f32.mrf.mxu0 }
 0x128   : > { %v2405_v20 = vmul.f32 0.0625, %v440_v11  ;;  %v451_v21 = vadd.f32 %v450_v12, %v449_v3  ;;  %v486_v22 = vrot.slane %v485_v13, 1  ;;  %v495_v23 = vadd.f32 %v494_v14, %v493_v5 }
 0x129   : > { %v530_v24 = vrot.slane %v529_v15, 2  ;;  %v539_v25 = vadd.f32 %v538_v16, %v537_v8  ;;  %v574_v26 = vrot.slane %v573_v17, 4  ;;  %v583_v27 = vadd.f32 %v582_v9, %v581_v18  ;;  %v2407_v28 = vpop.f32.mrf.mxu0 }
 0x12a   : > { %v452_v29 = vmul.f32 0.0625, %v451_v21  ;;  %v453_v30 = vmul.f32 %v2405_v20, %v2405_v20  ;;  %v487_v31 = vadd.f32 %v486_v22, %v485_v13  ;;  %v496_v32 = vrot.slane %v495_v23, 1 }
 0x12b   : > { %v531_v33 = vadd.f32 %v530_v24, %v529_v15  ;;  %v540_v34 = vrot.slane %v539_v25, 2  ;;  %v575_v35 = vadd.f32 %v574_v26, %v573_v17  ;;  %v584_v38 = vrot.slane %v583_v27, 4  ;;  %v2411_v39 = vpop.f32.mrf.mxu0 }
 0x12c   : > { %v454_v40 = vsub.f32 %v452_v29, %v453_v30  ;;  %v2413_v42 = vmul.f32 0.0625, %v487_v31  ;;  %v497_v43 = vadd.f32 %v496_v32, %v495_v23  ;;  %v628_v44 = vmul.f32 %v2403_v19, %v2403_v19 }
 0x12d   : > { %v532_v45 = vrot.slane %v531_v33, 1  ;;  %v541_v47 = vadd.f32 %v540_v34, %v539_v25  ;;  %v576_v48 = vrot.slane %v575_v35, 2  ;;  %v585_v49 = vadd.f32 %v584_v38, %v583_v27  ;;  %v2417_v50 = vpop.f32.mrf.mxu0 }
 0x12e   : > { %v455_v52 = vmax.f32 %v454_v40, 0.0  ;;  %v498_v53 = vmul.f32 0.0625, %v497_v43  ;;  %v499_v54 = vmul.f32 %v2413_v42, %v2413_v42  ;;  %v619_v55 = vadd.f32 %v2403_v19, %v2407_v28 }
 0x12f   : > { %v533_v56 = vadd.f32 %v532_v45, %v531_v33  ;;  %v542_v58 = vrot.slane %v541_v47, 1  ;;  %v577_v59 = vadd.f32 %v576_v48, %v575_v35  ;;  %v586_v60 = vrot.slane %v585_v49, 2  ;;  %v2425_v2 = vpop.f32.mrf.mxu0 }
 0x130   : > { %v456_v61 = vadd.f32 1e-05, %v455_v52  ;;  %v500_v62 = vsub.f32 %v498_v53, %v499_v54  ;;  %v620_v63 = vrot.slane %v619_v55, 4  ;;  %v627_v0 = vmul.f32 %v2407_v28, %v2407_v28 }
 0x131   : > { %v2427_v3 = vmul.f32 0.0625, %v533_v56  ;;  %v543_v4 = vadd.f32 %v542_v58, %v541_v47  ;;  %v578_v5 = vrot.slane %v577_v59, 1  ;;  %v587_v7 = vadd.f32 %v586_v60, %v585_v49  ;;  %v2433_v22 = vpop.f32.mrf.mxu0 }
 0x132   : > { %1961 = vrsqrt.f32 %v456_v61  ;;  %v501_v8 = vmax.f32 %v500_v62, 0.0  ;;  %v621_v9 = vadd.f32 %v620_v63, %v619_v55  ;;  %v629_v11 = vadd.f32 %v628_v44, %v627_v0 }
 0x133   : > { %v544_v12 = vmul.f32 0.0625, %v543_v4  ;;  %v545_v13 = vmul.f32 %v2427_v3, %v2427_v3  ;;  %v579_v14 = vadd.f32 %v578_v5, %v577_v59  ;;  %v588_v15 = vrot.slane %v587_v7, 1  ;;  %v2445_v44 = vpop.f32.mrf.mxu0  ;;  %v2455_v4 = vld [vmem:[#allocation6] sm:$0x1] }
 0x134   : > { %v502_v16 = vadd.f32 1e-05, %v501_v8  ;;  %v622_v17 = vrot.slane %v621_v9, 2  ;;  %v630_v18 = vrot.slane %v629_v11, 4  ;;  %v674_v21 = vmul.f32 %v2411_v39, %v2411_v39 }
 0x135   : > { %v546_v23 = vsub.f32 %v544_v12, %v545_v13  ;;  %v2435_v24 = vmul.f32 0.0625, %v579_v14  ;;  %v589_v25 = vadd.f32 %v588_v15, %v587_v7  ;;  %v665_v26 = vadd.f32 %v2411_v39, %v2417_v50  ;;  %v2453_v0 = vpop.f32.mrf.mxu0 }
 0x136   : > { %1963 = vrsqrt.f32 %v502_v16  ;;  %v623_v27 = vadd.f32 %v622_v17, %v621_v9  ;;  %v631_v29 = vadd.f32 %v630_v18, %v629_v11  ;;  %v673_v30 = vmul.f32 %v2417_v50, %v2417_v50 }
 0x137   : > { %v547_v31 = vmax.f32 %v546_v23, 0.0  ;;  %v590_v32 = vmul.f32 0.0625, %v589_v25  ;;  %v591_v33 = vmul.f32 %v2435_v24, %v2435_v24  ;;  %v666_v34 = vrot.slane %v665_v26, 4 }
 0x138   : > { %v624_v35 = vrot.slane %v623_v27, 1  ;;  %v632_v38 = vrot.slane %v631_v29, 2  ;;  %v675_v40 = vadd.f32 %v674_v21, %v673_v30  ;;  %v720_v43 = vmul.f32 %v2425_v2, %v2425_v2 }
 0x139   : > { %v548_v45 = vadd.f32 1e-05, %v547_v31  ;;  %v592_v47 = vsub.f32 %v590_v32, %v591_v33  ;;  %v667_v48 = vadd.f32 %v666_v34, %v665_v26  ;;  %v711_v49 = vadd.f32 %v2425_v2, %v2433_v22 }
 0x13a   : > { %v625_v52 = vadd.f32 %v624_v35, %v623_v27  ;;  %v633_v53 = vadd.f32 %v632_v38, %v631_v29  ;;  %v676_v54 = vrot.slane %v675_v40, 4  ;;  %v719_v55 = vmul.f32 %v2433_v22, %v2433_v22 }
 0x13b   : > { %1965 = vrsqrt.f32 %v548_v45  ;;  %v593_v56 = vmax.f32 %v592_v47, 0.0  ;;  %v668_v58 = vrot.slane %v667_v48, 2  ;;  %v712_v59 = vrot.slane %v711_v49, 4 }
 0x13c   : > { %v2451_v60 = vmul.f32 0.0625, %v625_v52  ;;  %v634_v61 = vrot.slane %v633_v53, 1  ;;  %v677_v62 = vadd.f32 %v676_v54, %v675_v40  ;;  %v721_v63 = vadd.f32 %v720_v43, %v719_v55 }
 0x13d   : > { %v594_v5 = vadd.f32 1e-05, %v593_v56  ;;  %v669_v7 = vadd.f32 %v668_v58, %v667_v48  ;;  %v713_v8 = vadd.f32 %v712_v59, %v711_v49  ;;  %v766_v9 = vmul.f32 %v2445_v44, %v2445_v44 }
 0x13e   : > { %v635_v11 = vadd.f32 %v634_v61, %v633_v53  ;;  %v637_v12 = vmul.f32 %v2451_v60, %v2451_v60  ;;  %v678_v13 = vrot.slane %v677_v62, 2  ;;  %v722_v14 = vrot.slane %v721_v63, 4 }
 0x13f   : > { %v1962_v15 = vpop.eup %1961  ;;  %1967 = vrsqrt.f32 %v594_v5  ;;  %v670_v16 = vrot.slane %v669_v7, 1  ;;  %v714_v17 = vrot.slane %v713_v8, 2  ;;  %v757_v18 = vadd.f32 %v2445_v44, %v2453_v0 }
 0x140   : > { %v458_v21 = vmul.f32 %v1962_v15, %v2455_v4  ;;  %v636_v23 = vmul.f32 0.0625, %v635_v11  ;;  %v679_v25 = vadd.f32 %v678_v13, %v677_v62  ;;  %v723_v26 = vadd.f32 %v722_v14, %v721_v63  ;;  %v2479_v63 = vld [vmem:[#allocation6 + $0x1] sm:$0x1] }
 0x141   : > { %v671_v27 = vadd.f32 %v670_v16, %v669_v7  ;;  %v715_v29 = vadd.f32 %v714_v17, %v713_v8  ;;  %v758_v30 = vrot.slane %v757_v18, 4  ;;  %v765_v31 = vmul.f32 %v2453_v0, %v2453_v0 }
 0x142   : > { %v459_v32 = vmul.f32 %v458_v21, %v2405_v20  ;;  %v464_v33 = vrot.slane %v458_v21, %v2393_v6  ;;  %v638_v34 = vsub.f32 %v636_v23, %v637_v12  ;;  %v680_v35 = vrot.slane %v679_v25, 1 }
 0x143   : > { %v1964_v38 = vpop.eup %1963  ;;  %v2468_v40 = vmul.f32 0.0625, %v671_v27  ;;  %v716_v43 = vrot.slane %v715_v29, 1  ;;  %v724_v45 = vrot.slane %v723_v26, 2  ;;  %v759_v47 = vadd.f32 %v758_v30, %v757_v18 }
 0x144   : > { %v465_v48 = vmul.f32 %v464_v33, %v2363_v37  ;;  %v2472_v49 = vmul.f32 %v2361_v36, %v464_v33  ;;  %v504_v52 = vmul.f32 %v1964_v38, %v2455_v4  ;;  %v639_v53 = vmax.f32 %v638_v34, 0.0 }
 0x145   : > { %v681_v54 = vadd.f32 %v680_v35, %v679_v25  ;;  %v683_v20 = vmul.f32 %v2468_v40, %v2468_v40  ;;  %v717_v55 = vadd.f32 %v716_v43, %v715_v29  ;;  %v725_v56 = vadd.f32 %v724_v45, %v723_v26 }
 0x146   : > { %v505_v58 = vmul.f32 %v504_v52, %v2413_v42  ;;  %v510_v59 = vrot.slane %v504_v52, %v2393_v6  ;;  %v640_v61 = vadd.f32 1e-05, %v639_v53  ;;  %v760_v62 = vrot.slane %v759_v47, 2 }
 0x147   : > { %v682_v37 = vmul.f32 0.0625, %v681_v54  ;;  %v2481_v36 = vmul.f32 0.0625, %v717_v55  ;;  %v726_v5 = vrot.slane %v725_v56, 1  ;;  %v767_v7 = vadd.f32 %v766_v9, %v765_v31 }
 0x148   : > { %v1966_v8 = vpop.eup %1965  ;;  %v506_v11 = vsub.f32 %v2479_v63, %v505_v58  ;;  %v511_v12 = vmul.f32 %v510_v59, %v2375_v46  ;;  %v512_v13 = vmul.f32 %v2371_v41, %v510_v59  ;;  %1969 = vrsqrt.f32 %v640_v61 }
 0x149   : > { %v550_v42 = vmul.f32 %v1966_v8, %v2455_v4  ;;  %v684_v14 = vsub.f32 %v682_v37, %v683_v20  ;;  %v727_v15 = vadd.f32 %v726_v5, %v725_v56  ;;  %v729_v16 = vmul.f32 %v2481_v36, %v2481_v36 }
 0x14a   : > { %v516_v17 = vrot.slane %v506_v11, %v2393_v6  ;;  %v761_v18 = vadd.f32 %v760_v62, %v759_v47  ;;  %v768_v21 = vrot.slane %v767_v7, 4  ;;  %v460_v9 = vsub.f32 %v2479_v63, %v459_v32 }
 0x14b   : > { %v551_v23 = vmul.f32 %v550_v42, %v2427_v3  ;;  %v556_v46 = vrot.slane %v550_v42, %v2393_v6  ;;  %v685_v25 = vmax.f32 %v684_v14, 0.0  ;;  %v728_v41 = vmul.f32 0.0625, %v727_v15 }
 0x14c   : > { %v1968_v26 = vpop.eup %1967  ;;  %v517_v27 = vadd.f32 %v516_v17, %v511_v12  ;;  %v762_v29 = vrot.slane %v761_v18, 1  ;;  %v769_v30 = vadd.f32 %v768_v21, %v767_v7  ;;  %v470_v31 = vrot.slane %v460_v9, %v2393_v6 }
 0x14d   : > { %v552_v33 = vsub.f32 %v2479_v63, %v551_v23  ;;  %v557_v34 = vmul.f32 %v556_v46, %v2383_v57  ;;  %v558_v35 = vmul.f32 %v2381_v51, %v556_v46  ;;  %v596_v32 = vmul.f32 %v1968_v26, %v2455_v4 }
 0x14e   : > { %v519_v38 = vmul.f32 0.5, %v517_v27  ;;  %v686_v3 = vadd.f32 1e-05, %v685_v25  ;;  %v730_v43 = vsub.f32 %v728_v41, %v729_v16  ;;  %v763_v45 = vadd.f32 %v762_v29, %v761_v18 }
 0x14f   : > { %v562_v47 = vrot.slane %v552_v33, %v2393_v6  ;;  %v597_v52 = vmul.f32 %v596_v32, %v2435_v24  ;;  %v602_v53 = vrot.slane %v596_v32, %v2393_v6  ;;  %v770_v54 = vrot.slane %v769_v30, 2 }
 0x150   : > { %1971 = vtanh.f32 %v519_v38  ;;  %v731_v20 = vmax.f32 %v730_v43, 0.0  ;;  %v2501_v55 = vmul.f32 0.0625, %v763_v45  ;;  %v471_v57 = vadd.f32 %v470_v31, %v465_v48 }
 0x151   : > { %v563_v56 = vadd.f32 %v562_v47, %v557_v34  ;;  %v598_v51 = vsub.f32 %v2479_v63, %v597_v52  ;;  %v603_v58 = vmul.f32 %v602_v53, %v2397_v10  ;;  %v604_v59 = vmul.f32 %v2391_v1, %v602_v53 }
 0x152   : > { %1973 = vrsqrt.f32 %v686_v3  ;;  %v732_v61 = vadd.f32 1e-05, %v731_v20  ;;  %v771_v62 = vadd.f32 %v770_v54, %v769_v30  ;;  %v775_v24 = vmul.f32 %v2501_v55, %v2501_v55 }
 0x153   : > { %v565_v37 = vmul.f32 0.5, %v563_v56  ;;  %v608_v5 = vrot.slane %v598_v51, %v2393_v6  ;;  %v473_v7 = vmul.f32 0.5, %v471_v57  ;;  %v472_v8 = vadd.f32 %v470_v31, %v2472_v49 }
 0x154   : > { %1975 = vrsqrt.f32 %v732_v61  ;;  %v772_v48 = vrot.slane %v771_v62, 1  ;;  %v518_v11 = vadd.f32 %v516_v17, %v512_v13  ;;  %v564_v12 = vadd.f32 %v562_v47, %v558_v35 }
 0x155   : > { %v1970_v42 = vpop.eup %1969  ;;  %1977 = vtanh.f32 %v565_v37  ;;  %v609_v10 = vadd.f32 %v608_v5, %v603_v58  ;;  %v474_v1 = vmul.f32 0.5, %v472_v8  ;;  %v610_v14 = vadd.f32 %v608_v5, %v604_v59 }
 0x156   : > { %v642_v15 = vmul.f32 %v1970_v42, %v2455_v4  ;;  %v773_v16 = vadd.f32 %v772_v48, %v771_v62  ;;  %1979 = vtanh.f32 %v473_v7  ;;  %v520_v18 = vmul.f32 0.5, %v518_v11 }
 0x157   : > { %v611_v21 = vmul.f32 0.5, %v609_v10  ;;  %1981 = vtanh.f32 %v474_v1  ;;  %v566_v9 = vmul.f32 0.5, %v564_v12  ;;  %v612_v25 = vmul.f32 0.5, %v610_v14 }
 0x158   : > { %v643_v23 = vmul.f32 %v642_v15, %v2451_v60  ;;  %v648_v49 = vrot.slane %v642_v15, %v2393_v6  ;;  %v774_v46 = vmul.f32 0.0625, %v773_v16  ;;  %1983 = vtanh.f32 %v520_v18 }
 0x159   : > { %1985 = vtanh.f32 %v611_v21 }
 0x15a   : > { %v644_v13 = vsub.f32 %v2479_v63, %v643_v23  ;;  %v776_v17 = vsub.f32 %v774_v46, %v775_v24  ;;  %1987 = vtanh.f32 %v566_v9  ;;  %v649_v41 = vmul.f32 %v648_v49, %v2407_v28 }
 0x15b   : > { %v650_v26 = vmul.f32 %v2403_v19, %v648_v49  ;;  %1989 = vtanh.f32 %v612_v25 }
 0x15c   : > { %v654_v27 = vrot.slane %v644_v13, %v2393_v6  ;;  %v777_v29 = vmax.f32 %v776_v17, 0.0 }
 0x15d   : > { %v1972_v30 = vpop.eup %1971 }
 0x15e   : > { %v655_v31 = vadd.f32 %v654_v27, %v649_v41  ;;  %v778_v60 = vadd.f32 1e-05, %v777_v29  ;;  %v656_v33 = vadd.f32 %v654_v27, %v650_v26  ;;  %v523_v3 = vmul.f32 0.5, %v1972_v30 }
 0x15f   : > { %v1974_v34 = vpop.eup %1973 }
 0x160   : > { %v657_v35 = vmul.f32 0.5, %v655_v31  ;;  %v688_v32 = vmul.f32 %v1974_v34, %v2455_v4  ;;  %1991 = vrsqrt.f32 %v778_v60  ;;  %v658_v43 = vmul.f32 0.5, %v656_v33 }
 0x161   : > { %v1976_v38 = vpop.eup %1975  ;;  %v525_v59 = vadd.f32 0.5, %v523_v3 }
 0x162   : > { %v1978_v45 = vpop.eup %1977  ;;  %1993 = vtanh.f32 %v657_v35  ;;  %v689_v19 = vmul.f32 %v688_v32, %v2468_v40  ;;  %v694_v28 = vrot.slane %v688_v32, %v2393_v6  ;;  %v734_v47 = vmul.f32 %v1976_v38, %v2455_v4 }
 0x163   : > { %v1980_v52 = vpop.eup %1979  ;;  %1995 = vtanh.f32 %v658_v43  ;;  %v569_v48 = vmul.f32 0.5, %v1978_v45 }
 0x164   : > { %v1982_v53 = vpop.eup %1981  ;;  %v690_v54 = vsub.f32 %v2479_v63, %v689_v19  ;;  %v735_v20 = vmul.f32 %v734_v47, %v2481_v36  ;;  %v740_v56 = vrot.slane %v734_v47, %v2393_v6  ;;  %v477_v51 = vmul.f32 0.5, %v1980_v52 }
 0x165   : > { %v1984_v57 = vpop.eup %1983  ;;  %v478_v58 = vmul.f32 0.5, %v1982_v53  ;;  %v695_v61 = vmul.f32 %v694_v28, %v2417_v50  ;;  %v696_v5 = vmul.f32 %v2411_v39, %v694_v28  ;;  %v571_v39 = vadd.f32 0.5, %v569_v48  ;;  %v1346_v48 = vld [vmem:[#allocation4 + $0x150] sm:$0xff] }
 0x166   : > { %v700_v40 = vrot.slane %v690_v54, %v2393_v6  ;;  %v736_v62 = vsub.f32 %v2479_v63, %v735_v20  ;;  %v524_v24 = vmul.f32 0.5, %v1984_v57  ;;  %v1986_v37 = vpop.eup %1985  ;;  %v479_v7 = vadd.f32 0.5, %v477_v51 }
 0x167   : > { %v480_v8 = vadd.f32 0.5, %v478_v58  ;;  %v1988_v36 = vpop.eup %1987  ;;  %v741_v12 = vmul.f32 %v740_v56, %v2433_v22  ;;  %v742_v10 = vmul.f32 %v2425_v2, %v740_v56  ;;  %v615_v21 = vmul.f32 0.5, %v1986_v37  ;;  %v1350_v37 = vld [vmem:[#allocation4 + $0x170] sm:$0xff] }
 0x168   : > { %v701_v11 = vadd.f32 %v700_v40, %v695_v61  ;;  %v746_v42 = vrot.slane %v736_v62, %v2393_v6  ;;  %1787 = vmatprep.mubr.f32.mxu1 %v479_v7  ;;  %v702_v50 = vadd.f32 %v700_v40, %v696_v5  ;;  %v526_v15 = vadd.f32 0.5, %v524_v24  ;;  %v1990_v18 = vpop.eup %1989  ;;  %v1351_v24 = vld [vmem:[#allocation4 + $0x178] sm:$0xff]  ;;  %v1349_v5 = vld [vmem:[#allocation4 + $0x168] sm:$0xff]  ;;  %v1348_v7 = vld [vmem:[#allocation4 + $0x160] sm:$0xff] }
 0x169   : > { %1788 = vmatmul.mubr.f32.vlgmr.msra.gmra.mxu1 %v480_v8  ;;  %v570_v16 = vmul.f32 0.5, %v1988_v36  ;;  %v616_v17 = vmul.f32 0.5, %v1990_v18  ;;  %v617_v41 = vadd.f32 0.5, %v615_v21  ;;  %1811 = vmatprep.subr.mxu0 %v1351_v24  ;;  %v1347_v8 = vld [vmem:[#allocation4 + $0x158] sm:$0xff]  ;;  %v1345_v36 = vld [vmem:[#allocation4 + $0x148] sm:$0xff] }
 0x16a   : > { %v703_v1 = vmul.f32 0.5, %v701_v11  ;;  %v747_v14 = vadd.f32 %v746_v42, %v741_v12  ;;  %1790 = vmatprep.mubr.f32.mxu1 %v525_v59  ;;  %v704_v9 = vmul.f32 0.5, %v702_v50  ;;  %v748_v23 = vadd.f32 %v746_v42, %v742_v10  ;;  %1867 = vmatprep.subr.mxu1 %v1351_v24  ;;  %v1344_v11 = vld [vmem:[#allocation4 + $0x140] sm:$0xff]  ;;  %v1343_v12 = vld [vmem:[#allocation4 + $0x138] sm:$0xff]  ;;  %v1342_v42 = vld [vmem:[#allocation4 + $0x130] sm:$0xff] }
 0x16b   : > { %v572_v13 = vadd.f32 0.5, %v570_v16  ;;  %v618_v60 = vadd.f32 0.5, %v616_v17  ;;  %1812 = vmatpush3.msra.mxu0 %v1351_v24  ;;  %1883 = vmatpush3.msra.mxu1 %v1351_v24  ;;  %v1341_v10 = vld [vmem:[#allocation4 + $0x128] sm:$0xff]  ;;  %v1340_v50 = vld [vmem:[#allocation4 + $0x120] sm:$0xff] }
 0x16c   : > { %1997 = vtanh.f32 %v703_v1  ;;  %v749_v49 = vmul.f32 0.5, %v747_v14  ;;  %v750_v46 = vmul.f32 0.5, %v748_v23  ;;  %1813 = vmatprep.subr.mxu0 %v1350_v37  ;;  %1868 = vmatprep.subr.mxu1 %v1350_v37  ;;  %v1339_v1 = vld [vmem:[#allocation4 + $0x118] sm:$0xff]  ;;  %v1338_v14 = vld [vmem:[#allocation4 + $0x110] sm:$0xff]  ;;  %v1336_v16 = vld [vmem:[#allocation4 + $0x100] sm:$0xff] }
 0x16d   : > { %v1992_v22 = vpop.eup %1991  ;;  %1999 = vtanh.f32 %v704_v9  ;;  %1791 = vmatmul.mubr.f32.gmra.mxu1 %v526_v15  ;;  %1814 = vmatpush3.msra.mxu0 %v1350_v37  ;;  %v1337_v15 = vld [vmem:[#allocation4 + $0x108] sm:$0xff] }
 0x16e   : > { %2001 = vtanh.f32 %v749_v49  ;;  %v780_v2 = vmul.f32 %v1992_v22, %v2455_v4  ;;  %1793 = vmatprep.mubr.f32.mxu1 %v571_v39  ;;  %1884 = vmatpush3.msra.mxu1 %v1350_v37 }
 0x16f   : > { %v1994_v25 = vpop.eup %1993  ;;  %2003 = vtanh.f32 %v750_v46  ;;  %1815 = vmatprep.subr.mxu0 %v1349_v5  ;;  %1869 = vmatprep.subr.mxu1 %v1349_v5 }
 0x170   : > { %v1996_v26 = vpop.eup %1995  ;;  %v781_v27 = vmul.f32 %v780_v2, %v2501_v55  ;;  %v786_v29 = vrot.slane %v780_v2, %v2393_v6  ;;  %v661_v30 = vmul.f32 0.5, %v1994_v25  ;;  %1816 = vmatpush3.msra.mxu0 %v1349_v5  ;;  %1885 = vmatpush3.msra.mxu1 %v1349_v5 }
 0x171   : > { %1794 = vmatmul.mubr.f32.gmra.mxu1 %v572_v13  ;;  %v662_v33 = vmul.f32 0.5, %v1996_v26  ;;  %1817 = vmatprep.subr.mxu0 %v1348_v7 }
 0x172   : > { %v782_v31 = vsub.f32 %v2479_v63, %v781_v27  ;;  %1796 = vmatprep.mubr.f32.mxu1 %v617_v41  ;;  %v663_v4 = vadd.f32 0.5, %v661_v30  ;;  %v787_v34 = vmul.f32 %v786_v29, %v2453_v0  ;;  %v788_v35 = vmul.f32 %v2445_v44, %v786_v29  ;;  %1870 = vmatprep.subr.mxu1 %v1348_v7 }
 0x173   : > { %v664_v3 = vadd.f32 0.5, %v662_v33  ;;  %1818 = vmatpush3.msra.mxu0 %v1348_v7  ;;  %1886 = vmatpush3.msra.mxu1 %v1348_v7 }
 0x174   : > { %v792_v32 = vrot.slane %v782_v31, %v2393_v6  ;;  %1819 = vmatprep.subr.mxu0 %v1347_v8  ;;  %1871 = vmatprep.subr.mxu1 %v1347_v8 }
 0x175   : > { %1797 = vmatmul.mubr.f32.gmra.mxu1 %v618_v60  ;;  %1820 = vmatpush3.msra.mxu0 %v1347_v8 }
 0x176   : > { %v793_v38 = vadd.f32 %v792_v32, %v787_v34  ;;  %v794_v55 = vadd.f32 %v792_v32, %v788_v35  ;;  %1799 = vmatprep.mubr.f32.mxu1 %v663_v4  ;;  %1887 = vmatpush3.msra.mxu1 %v1347_v8 }
 0x177   : > { %1821 = vmatprep.subr.mxu0 %v1346_v48  ;;  %1872 = vmatprep.subr.mxu1 %v1346_v48 }
 0x178   : > { %v795_v43 = vmul.f32 0.5, %v793_v38  ;;  %v796_v45 = vmul.f32 0.5, %v794_v55  ;;  %1822 = vmatpush3.msra.mxu0 %v1346_v48  ;;  %1888 = vmatpush3.msra.mxu1 %v1346_v48 }
 0x179   : > { %v1998_v19 = vpop.eup %1997  ;;  %1800 = vmatmul.mubr.f32.gmra.mxu1 %v664_v3  ;;  %1823 = vmatprep.subr.mxu0 %v1345_v36 }
 0x17a   : > { %v2000_v63 = vpop.eup %1999  ;;  %2005 = vtanh.f32 %v795_v43  ;;  %v707_v28 = vmul.f32 0.5, %v1998_v19  ;;  %1873 = vmatprep.subr.mxu1 %v1345_v36  ;;  %1824 = vmatpush3.msra.mxu0 %v1345_v36 }
 0x17b   : > { %v2002_v47 = vpop.eup %2001  ;;  %v708_v52 = vmul.f32 0.5, %v2000_v63  ;;  %2007 = vtanh.f32 %v796_v45  ;;  %1889 = vmatpush3.msra.mxu1 %v1345_v36  ;;  %1825 = vmatprep.subr.mxu0 %v1344_v11 }
 0x17c   : > { %v2004_v0 = vpop.eup %2003  ;;  %v709_v53 = vadd.f32 0.5, %v707_v28  ;;  %v753_v44 = vmul.f32 0.5, %v2002_v47  ;;  %1874 = vmatprep.subr.mxu1 %v1344_v11  ;;  %1826 = vmatpush3.msra.mxu0 %v1344_v11 }
 0x17d   : > { %v710_v54 = vadd.f32 0.5, %v708_v52  ;;  %v754_v20 = vmul.f32 0.5, %v2004_v0  ;;  %1890 = vmatpush3.msra.mxu1 %v1344_v11  ;;  %1827 = vmatprep.subr.mxu0 %v1343_v12 }
 0x17e   : > { %1802 = vmatprep.mubr.f32.mxu1 %v709_v53  ;;  %v755_v57 = vadd.f32 0.5, %v753_v44  ;;  %1875 = vmatprep.subr.mxu1 %v1343_v12 }
 0x17f   : > { %1803 = vmatmul.mubr.f32.gmra.mxu1 %v710_v54  ;;  %v756_v56 = vadd.f32 0.5, %v754_v20  ;;  %1828 = vmatpush3.msra.mxu0 %v1343_v12 }
 0x180   : > { %1805 = vmatprep.mubr.f32.mxu1 %v755_v57  ;;  %1891 = vmatpush3.msra.mxu1 %v1343_v12 }
 0x181   : > { %1829 = vmatprep.subr.mxu0 %v1342_v42  ;;  %1876 = vmatprep.subr.mxu1 %v1342_v42 }
 0x182   : > { %1830 = vmatpush3.msra.mxu0 %v1342_v42  ;;  %1892 = vmatpush3.msra.mxu1 %v1342_v42 }
 0x183   : > { %1806 = vmatmul.mubr.f32.gmra.mxu1 %v756_v56  ;;  %1831 = vmatprep.subr.mxu0 %v1341_v10 }
 0x184   : > { %1877 = vmatprep.subr.mxu1 %v1341_v10  ;;  %1832 = vmatpush3.msra.mxu0 %v1341_v10 }
 0x185   : > { %1893 = vmatpush3.msra.mxu1 %v1341_v10  ;;  %1833 = vmatprep.subr.mxu0 %v1340_v50 }
 0x186   : > { %1878 = vmatprep.subr.mxu1 %v1340_v50  ;;  %1834 = vmatpush3.msra.mxu0 %v1340_v50 }
 0x187   : > { %v2006_v51 = vpop.eup %2005  ;;  %1894 = vmatpush3.msra.mxu1 %v1340_v50  ;;  %1835 = vmatprep.subr.mxu0 %v1339_v1 }
 0x188   : > { %v2008_v58 = vpop.eup %2007  ;;  %v799_v59 = vmul.f32 0.5, %v2006_v51  ;;  %1879 = vmatprep.subr.mxu1 %v1339_v1  ;;  %1836 = vmatpush3.msra.mxu0 %v1339_v1 }
 0x189   : > { %v800_v61 = vmul.f32 0.5, %v2008_v58  ;;  %1895 = vmatpush3.msra.mxu1 %v1339_v1  ;;  %1837 = vmatprep.subr.mxu0 %v1338_v14 }
 0x18a   : > { %v801_v40 = vadd.f32 0.5, %v799_v59  ;;  %1880 = vmatprep.subr.mxu1 %v1338_v14  ;;  %1838 = vmatpush3.msra.mxu0 %v1338_v14 }
 0x18b   : > { %v802_v62 = vadd.f32 0.5, %v800_v61  ;;  %1896 = vmatpush3.msra.mxu1 %v1338_v14  ;;  %1839 = vmatprep.subr.mxu0 %v1337_v15 }
 0x18c   : > { %1808 = vmatprep.mubr.f32.mxu1 %v801_v40  ;;  %1881 = vmatprep.subr.mxu1 %v1337_v15 }
 0x18d   : > { %1809 = vmatmul.mubr.f32.gmra.mxu1 %v802_v62  ;;  %1840 = vmatpush3.msra.mxu0 %v1337_v15 }
 0x18e   : > { %1897 = vmatpush3.msra.mxu1 %v1337_v15  ;;  %1841 = vmatprep.subr.mxu0 %v1336_v16 }
 0x18f   : > { %1882 = vmatprep.subr.mxu1 %v1336_v16  ;;  %1842 = vmatpush3.msra.mxu0 %v1336_v16 }
 0x190   : > { %1898 = vmatpush3.msra.mxu1 %v1336_v16 }
 0x229   : > { %v2538_v18 = vpop.f32.mrf.mxu1 }
 0x22a   : > { %v976_v21 = vmul.f32 %v2538_v18, %v2538_v18 }
 0x22b   : > { %v2540_v39 = vpop.f32.mrf.mxu1 }
 0x22c   : > { %v967_v9 = vadd.f32 %v2538_v18, %v2540_v39  ;;  %v975_v23 = vmul.f32 %v2540_v39, %v2540_v39 }
 0x22d   : > { %v2548_v49 = vpop.f32.mrf.mxu1 }
 0x22e   : > { %v968_v22 = vrot.slane %v967_v9, 4  ;;  %v977_v46 = vadd.f32 %v976_v21, %v975_v23  ;;  %v1022_v2 = vmul.f32 %v2548_v49, %v2548_v49 }
 0x22f   : > { %v2552_v13 = vpop.f32.mrf.mxu1 }
 0x230   : > { %v969_v17 = vadd.f32 %v968_v22, %v967_v9  ;;  %v978_v25 = vrot.slane %v977_v46, 4  ;;  %v1013_v41 = vadd.f32 %v2548_v49, %v2552_v13  ;;  %v1021_v26 = vmul.f32 %v2552_v13, %v2552_v13 }
 0x231   : > { %v2558_v27 = vpop.f32.mrf.mxu1 }
 0x232   : > { %v970_v29 = vrot.slane %v969_v17, 2  ;;  %v979_v30 = vadd.f32 %v978_v25, %v977_v46  ;;  %v1014_v31 = vrot.slane %v1013_v41, 4  ;;  %v1023_v60 = vadd.f32 %v1022_v2, %v1021_v26 }
 0x233   : > { %v2560_v33 = vpop.f32.mrf.mxu1  ;;  %v1068_v38 = vmul.f32 %v2558_v27, %v2558_v27 }
 0x234   : > { %v971_v4 = vadd.f32 %v970_v29, %v969_v17  ;;  %v980_v34 = vrot.slane %v979_v30, 2  ;;  %v1015_v35 = vadd.f32 %v1014_v31, %v1013_v41  ;;  %v1024_v32 = vrot.slane %v1023_v60, 4 }
 0x235   : > { %v1059_v3 = vadd.f32 %v2558_v27, %v2560_v33  ;;  %v1067_v55 = vmul.f32 %v2560_v33, %v2560_v33  ;;  %v2568_v43 = vpop.f32.mrf.mxu1 }
 0x236   : > { %v972_v45 = vrot.slane %v971_v4, 1  ;;  %v981_v19 = vadd.f32 %v980_v34, %v979_v30  ;;  %v1016_v63 = vrot.slane %v1015_v35, 2  ;;  %v1025_v28 = vadd.f32 %v1024_v32, %v1023_v60 }
 0x237   : > { %v1060_v47 = vrot.slane %v1059_v3, 4  ;;  %v1069_v52 = vadd.f32 %v1068_v38, %v1067_v55  ;;  %v1114_v0 = vmul.f32 %v2568_v43, %v2568_v43  ;;  %v2572_v53 = vpop.f32.mrf.mxu1 }
 0x238   : > { %v973_v44 = vadd.f32 %v972_v45, %v971_v4  ;;  %v982_v54 = vrot.slane %v981_v19, 1  ;;  %v1017_v20 = vadd.f32 %v1016_v63, %v1015_v35  ;;  %v1026_v57 = vrot.slane %v1025_v28, 2 }
 0x239   : > { %v1061_v56 = vadd.f32 %v1060_v47, %v1059_v3  ;;  %v1070_v51 = vrot.slane %v1069_v52, 4  ;;  %v1105_v58 = vadd.f32 %v2568_v43, %v2572_v53  ;;  %v1113_v59 = vmul.f32 %v2572_v53, %v2572_v53  ;;  %v2578_v61 = vpop.f32.mrf.mxu1 }
 0x23a   : > { %v2580_v40 = vmul.f32 0.0625, %v973_v44  ;;  %v983_v62 = vadd.f32 %v982_v54, %v981_v19  ;;  %v1018_v24 = vrot.slane %v1017_v20, 1  ;;  %v1027_v37 = vadd.f32 %v1026_v57, %v1025_v28 }
 0x23b   : > { %v1062_v5 = vrot.slane %v1061_v56, 2  ;;  %v1071_v7 = vadd.f32 %v1070_v51, %v1069_v52  ;;  %v1106_v8 = vrot.slane %v1105_v58, 4  ;;  %v1115_v48 = vadd.f32 %v1114_v0, %v1113_v59  ;;  %v2582_v36 = vpop.f32.mrf.mxu1 }
 0x23c   : > { %v984_v11 = vmul.f32 0.0625, %v983_v62  ;;  %v985_v12 = vmul.f32 %v2580_v40, %v2580_v40  ;;  %v1019_v42 = vadd.f32 %v1018_v24, %v1017_v20  ;;  %v1028_v10 = vrot.slane %v1027_v37, 1 }
 0x23d   : > { %v1063_v50 = vadd.f32 %v1062_v5, %v1061_v56  ;;  %v1072_v1 = vrot.slane %v1071_v7, 2  ;;  %v1107_v14 = vadd.f32 %v1106_v8, %v1105_v58  ;;  %v1116_v15 = vrot.slane %v1115_v48, 4 }
 0x23e   : > { %v986_v16 = vsub.f32 %v984_v11, %v985_v12  ;;  %v2586_v21 = vmul.f32 0.0625, %v1019_v42  ;;  %v1029_v9 = vadd.f32 %v1028_v10, %v1027_v37  ;;  %v1160_v23 = vmul.f32 %v2578_v61, %v2578_v61 }
 0x23f   : > { %v2590_v22 = vpop.f32.mrf.mxu1  ;;  %v1064_v46 = vrot.slane %v1063_v50, 1  ;;  %v1073_v2 = vadd.f32 %v1072_v1, %v1071_v7  ;;  %v1108_v17 = vrot.slane %v1107_v14, 2  ;;  %v1117_v25 = vadd.f32 %v1116_v15, %v1115_v48 }
 0x240   : > { %v987_v41 = vmax.f32 %v986_v16, 0.0  ;;  %v1030_v26 = vmul.f32 0.0625, %v1029_v9  ;;  %v1031_v29 = vmul.f32 %v2586_v21, %v2586_v21  ;;  %v1151_v30 = vadd.f32 %v2578_v61, %v2582_v36 }
 0x241   : > { %v2596_v31 = vpop.f32.mrf.mxu1  ;;  %v1065_v60 = vadd.f32 %v1064_v46, %v1063_v50  ;;  %v1074_v4 = vrot.slane %v1073_v2, 1  ;;  %v1109_v34 = vadd.f32 %v1108_v17, %v1107_v14  ;;  %v1118_v35 = vrot.slane %v1117_v25, 2 }
 0x242   : > { %v988_v32 = vadd.f32 1e-05, %v987_v41  ;;  %v1032_v38 = vsub.f32 %v1030_v26, %v1031_v29  ;;  %v1152_v3 = vrot.slane %v1151_v30, 4  ;;  %v1159_v55 = vmul.f32 %v2582_v36, %v2582_v36 }
 0x243   : > { %v2600_v45 = vmul.f32 0.0625, %v1065_v60  ;;  %v1075_v19 = vadd.f32 %v1074_v4, %v1073_v2  ;;  %v1110_v63 = vrot.slane %v1109_v34, 1  ;;  %v1119_v28 = vadd.f32 %v1118_v35, %v1117_v25  ;;  %v2602_v44 = vpop.f32.mrf.mxu1 }
 0x244   : > { %2009 = vrsqrt.f32 %v988_v32  ;;  %v1033_v47 = vmax.f32 %v1032_v38, 0.0  ;;  %v1153_v52 = vadd.f32 %v1152_v3, %v1151_v30  ;;  %v1161_v0 = vadd.f32 %v1160_v23, %v1159_v55 }
 0x245   : > { %v1076_v54 = vmul.f32 0.0625, %v1075_v19  ;;  %v1077_v20 = vmul.f32 %v2600_v45, %v2600_v45  ;;  %v1111_v57 = vadd.f32 %v1110_v63, %v1109_v34  ;;  %v1120_v56 = vrot.slane %v1119_v28, 1  ;;  %v2614_v12 = vpop.f32.mrf.mxu1  ;;  %v2630_v19 = vld [vmem:[#allocation6 + $0x2] sm:$0x1] }
 0x246   : > { %v1034_v51 = vadd.f32 1e-05, %v1033_v47  ;;  %v1154_v58 = vrot.slane %v1153_v52, 2  ;;  %v1162_v59 = vrot.slane %v1161_v0, 4  ;;  %v1206_v62 = vmul.f32 %v2590_v22, %v2590_v22 }
 0x247   : > { %v1078_v24 = vsub.f32 %v1076_v54, %v1077_v20  ;;  %v2608_v37 = vmul.f32 0.0625, %v1111_v57  ;;  %v1121_v5 = vadd.f32 %v1120_v56, %v1119_v28  ;;  %v1197_v7 = vadd.f32 %v2590_v22, %v2596_v31 }
 0x248   : > { %2011 = vrsqrt.f32 %v1034_v51  ;;  %v1155_v8 = vadd.f32 %v1154_v58, %v1153_v52  ;;  %v1163_v48 = vadd.f32 %v1162_v59, %v1161_v0  ;;  %v1205_v11 = vmul.f32 %v2596_v31, %v2596_v31 }
 0x249   : > { %v1079_v42 = vmax.f32 %v1078_v24, 0.0  ;;  %v1122_v10 = vmul.f32 0.0625, %v1121_v5  ;;  %v1123_v50 = vmul.f32 %v2608_v37, %v2608_v37  ;;  %v1198_v1 = vrot.slane %v1197_v7, 4 }
 0x24a   : > { %v1156_v14 = vrot.slane %v1155_v8, 1  ;;  %v1164_v15 = vrot.slane %v1163_v48, 2  ;;  %v1207_v16 = vadd.f32 %v1206_v62, %v1205_v11  ;;  %v1252_v9 = vmul.f32 %v2602_v44, %v2602_v44 }
 0x24b   : > { %v1080_v23 = vadd.f32 1e-05, %v1079_v42  ;;  %v1124_v46 = vsub.f32 %v1122_v10, %v1123_v50  ;;  %v1199_v2 = vadd.f32 %v1198_v1, %v1197_v7  ;;  %v1243_v17 = vadd.f32 %v2602_v44, %v2614_v12  ;;  %v2637_v7 = vld [vmem:[#allocation6 + $0x3] sm:$0x1] }
 0x24c   : > { %v1157_v25 = vadd.f32 %v1156_v14, %v1155_v8  ;;  %v1165_v41 = vadd.f32 %v1164_v15, %v1163_v48  ;;  %v1208_v26 = vrot.slane %v1207_v16, 4  ;;  %v1251_v29 = vmul.f32 %v2614_v12, %v2614_v12 }
 0x24d   : > { %v2624_v30 = vpop.f32.mrf.mxu1  ;;  %2013 = vrsqrt.f32 %v1080_v23  ;;  %v1125_v60 = vmax.f32 %v1124_v46, 0.0  ;;  %v1200_v4 = vrot.slane %v1199_v2, 2  ;;  %v1244_v34 = vrot.slane %v1243_v17, 4 }
 0x24e   : > { %v2626_v35 = vmul.f32 0.0625, %v1157_v25  ;;  %v1166_v32 = vrot.slane %v1165_v41, 1  ;;  %v1209_v38 = vadd.f32 %v1208_v26, %v1207_v16  ;;  %v1253_v3 = vadd.f32 %v1252_v9, %v1251_v29 }
 0x24f   : > { %v2628_v55 = vpop.f32.mrf.mxu1  ;;  %v1126_v63 = vadd.f32 1e-05, %v1125_v60  ;;  %v1201_v28 = vadd.f32 %v1200_v4, %v1199_v2  ;;  %v1245_v47 = vadd.f32 %v1244_v34, %v1243_v17  ;;  %v1298_v11 = vmul.f32 %v2624_v30, %v2624_v30 }
 0x250   : > { %v1167_v52 = vadd.f32 %v1166_v32, %v1165_v41  ;;  %v1169_v0 = vmul.f32 %v2626_v35, %v2626_v35  ;;  %v1210_v54 = vrot.slane %v1209_v38, 2  ;;  %v1254_v20 = vrot.slane %v1253_v3, 4 }
 0x251   : > { %v2010_v57 = vpop.eup %2009  ;;  %2015 = vrsqrt.f32 %v1126_v63  ;;  %v1202_v56 = vrot.slane %v1201_v28, 1  ;;  %v1246_v51 = vrot.slane %v1245_v47, 2  ;;  %v1289_v58 = vadd.f32 %v2624_v30, %v2628_v55 }
 0x252   : > { %v990_v59 = vmul.f32 %v2010_v57, %v2630_v19  ;;  %v1168_v62 = vmul.f32 0.0625, %v1167_v52  ;;  %v1211_v24 = vadd.f32 %v1210_v54, %v1209_v38  ;;  %v1255_v5 = vadd.f32 %v1254_v20, %v1253_v3 }
 0x253   : > { %v1203_v8 = vadd.f32 %v1202_v56, %v1201_v28  ;;  %v1247_v48 = vadd.f32 %v1246_v51, %v1245_v47  ;;  %v1290_v42 = vrot.slane %v1289_v58, 4 }
 0x254   : > { %v991_v10 = vmul.f32 %v990_v59, %v2580_v40  ;;  %v996_v50 = vrot.slane %v990_v59, %v2393_v6  ;;  %v1170_v1 = vsub.f32 %v1168_v62, %v1169_v0  ;;  %v1212_v14 = vrot.slane %v1211_v24, 1 }
 0x255   : > { %v2012_v15 = vpop.eup %2011  ;;  %v2643_v16 = vmul.f32 0.0625, %v1203_v8  ;;  %v1248_v9 = vrot.slane %v1247_v48, 1  ;;  %v1256_v23 = vrot.slane %v1255_v5, 2  ;;  %v1291_v46 = vadd.f32 %v1290_v42, %v1289_v58 }
 0x256   : > { %v992_v2 = vsub.f32 %v2637_v7, %v991_v10  ;;  %v997_v17 = vmul.f32 %v996_v50, %v2540_v39  ;;  %v998_v25 = vmul.f32 %v2538_v18, %v996_v50  ;;  %v1036_v41 = vmul.f32 %v2012_v15, %v2630_v19 }
 0x257   : > { %v1171_v26 = vmax.f32 %v1170_v1, 0.0  ;;  %v1213_v40 = vadd.f32 %v1212_v14, %v1211_v24  ;;  %v1215_v29 = vmul.f32 %v2643_v16, %v2643_v16  ;;  %v1249_v60 = vadd.f32 %v1248_v9, %v1247_v48 }
 0x258   : > { %v1002_v4 = vrot.slane %v992_v2, %v2393_v6  ;;  %v1037_v34 = vmul.f32 %v1036_v41, %v2586_v21  ;;  %v1042_v32 = vrot.slane %v1036_v41, %v2393_v6  ;;  %v1257_v38 = vadd.f32 %v1256_v23, %v1255_v5 }
 0x259   : > { %v1172_v3 = vadd.f32 1e-05, %v1171_v26  ;;  %v1214_v63 = vmul.f32 0.0625, %v1213_v40  ;;  %v2654_v39 = vmul.f32 0.0625, %v1249_v60  ;;  %v1297_v18 = vmul.f32 %v2628_v55, %v2628_v55 }
 0x25a   : > { %v2014_v28 = vpop.eup %2013  ;;  %v1003_v47 = vadd.f32 %v1002_v4, %v997_v17  ;;  %v1004_v52 = vadd.f32 %v1002_v4, %v998_v25  ;;  %v1038_v0 = vsub.f32 %v2637_v7, %v1037_v34  ;;  %v1292_v54 = vrot.slane %v1291_v46, 2 }
 0x25b   : > { %v1043_v20 = vmul.f32 %v1042_v32, %v2552_v13  ;;  %v1082_v21 = vmul.f32 %v2014_v28, %v2630_v19  ;;  %2017 = vrsqrt.f32 %v1172_v3  ;;  %v1216_v57 = vsub.f32 %v1214_v63, %v1215_v29 }
 0x25c   : > { %v1005_v56 = vmul.f32 0.5, %v1003_v47  ;;  %v1006_v51 = vmul.f32 0.5, %v1004_v52  ;;  %v1048_v58 = vrot.slane %v1038_v0, %v2393_v6  ;;  %v1258_v59 = vrot.slane %v1257_v38, 1 }
 0x25d   : > { %v1083_v62 = vmul.f32 %v1082_v21, %v2600_v45  ;;  %v1088_v24 = vrot.slane %v1082_v21, %v2393_v6  ;;  %v1217_v5 = vmax.f32 %v1216_v57, 0.0  ;;  %v1261_v8 = vmul.f32 %v2654_v39, %v2654_v39 }
 0x25e   : > { %v2016_v48 = vpop.eup %2015  ;;  %2019 = vtanh.f32 %v1005_v56  ;;  %v1049_v13 = vadd.f32 %v1048_v58, %v1043_v20  ;;  %v1259_v42 = vadd.f32 %v1258_v59, %v1257_v38  ;;  %v1293_v10 = vadd.f32 %v1292_v54, %v1291_v46 }
 0x25f   : > { %2021 = vtanh.f32 %v1006_v51  ;;  %v1044_v50 = vmul.f32 %v2548_v49, %v1042_v32  ;;  %v1084_v1 = vsub.f32 %v2637_v7, %v1083_v62  ;;  %v1089_v14 = vmul.f32 %v1088_v24, %v2560_v33 }
 0x260   : > { %v1051_v15 = vmul.f32 0.5, %v1049_v13  ;;  %v1128_v45 = vmul.f32 %v2016_v48, %v2630_v19  ;;  %v1218_v9 = vadd.f32 1e-05, %v1217_v5  ;;  %v1260_v23 = vmul.f32 0.0625, %v1259_v42 }
 0x261   : > { %v1094_v2 = vrot.slane %v1084_v1, %v2393_v6  ;;  %v1294_v17 = vrot.slane %v1293_v10, 1  ;;  %v1299_v25 = vadd.f32 %v1298_v11, %v1297_v18  ;;  %v1050_v41 = vadd.f32 %v1048_v58, %v1044_v50 }
 0x262   : > { %2023 = vtanh.f32 %v1051_v15  ;;  %v1129_v46 = vmul.f32 %v1128_v45, %v2608_v37  ;;  %v1134_v26 = vrot.slane %v1128_v45, %v2393_v6  ;;  %v1262_v49 = vsub.f32 %v1260_v23, %v1261_v8 }
 0x263   : > { %v1095_v40 = vadd.f32 %v1094_v2, %v1089_v14  ;;  %2025 = vrsqrt.f32 %v1218_v9  ;;  %v1300_v29 = vrot.slane %v1299_v25, 4  ;;  %v1090_v33 = vmul.f32 %v2558_v27, %v1088_v24 }
 0x264   : > { %v1130_v60 = vsub.f32 %v2637_v7, %v1129_v46  ;;  %v1263_v4 = vmax.f32 %v1262_v49, 0.0  ;;  %v1295_v34 = vadd.f32 %v1294_v17, %v1293_v10  ;;  %v1135_v38 = vmul.f32 %v1134_v26, %v2572_v53 }
 0x265   : > { %v1097_v32 = vmul.f32 0.5, %v1095_v40  ;;  %v1301_v11 = vadd.f32 %v1300_v29, %v1299_v25  ;;  %v1052_v3 = vmul.f32 0.5, %v1050_v41  ;;  %v1136_v63 = vmul.f32 %v2568_v43, %v1134_v26 }
 0x266   : > { %v1140_v37 = vrot.slane %v1130_v60, %v2393_v6  ;;  %v1264_v18 = vadd.f32 1e-05, %v1263_v4  ;;  %v1096_v28 = vadd.f32 %v1094_v2, %v1090_v33  ;;  %v2679_v21 = vmul.f32 0.0625, %v1295_v34 }
 0x267   : > { %2027 = vtanh.f32 %v1097_v32  ;;  %v1302_v47 = vrot.slane %v1301_v11, 2 }
 0x268   : > { %v2018_v52 = vpop.eup %2017  ;;  %v1141_v0 = vadd.f32 %v1140_v37, %v1135_v38  ;;  %2029 = vrsqrt.f32 %v1264_v18  ;;  %v1098_v27 = vmul.f32 0.5, %v1096_v28  ;;  %v1142_v54 = vadd.f32 %v1140_v37, %v1136_v63 }
 0x269   : > { %v1174_v20 = vmul.f32 %v2018_v52, %v2630_v19  ;;  %v1303_v53 = vadd.f32 %v1302_v47, %v1301_v11  ;;  %2031 = vtanh.f32 %v1052_v3  ;;  %v1307_v48 = vmul.f32 %v2679_v21, %v2679_v21 }
 0x26a   : > { %v1143_v57 = vmul.f32 0.5, %v1141_v0  ;;  %2033 = vtanh.f32 %v1098_v27  ;;  %v1144_v43 = vmul.f32 0.5, %v1142_v54 }
 0x26b   : > { %v2020_v56 = vpop.eup %2019  ;;  %v1175_v51 = vmul.f32 %v1174_v20, %v2626_v35  ;;  %v1180_v58 = vrot.slane %v1174_v20, %v2393_v6  ;;  %v1304_v59 = vrot.slane %v1303_v53, 1 }
 0x26c   : > { %v2022_v62 = vpop.eup %2021  ;;  %2035 = vtanh.f32 %v1143_v57  ;;  %v1009_v24 = vmul.f32 0.5, %v2020_v56 }
 0x26d   : > { %v1176_v5 = vsub.f32 %v2637_v7, %v1175_v51  ;;  %v1305_v8 = vadd.f32 %v1304_v59, %v1303_v53  ;;  %v1010_v42 = vmul.f32 0.5, %v2022_v62  ;;  %2037 = vtanh.f32 %v1144_v43 }
 0x26e   : > { %v1011_v13 = vadd.f32 0.5, %v1009_v24  ;;  %v1181_v50 = vmul.f32 %v1180_v58, %v2582_v36  ;;  %v1182_v35 = vmul.f32 %v2578_v61, %v1180_v58 }
 0x26f   : > { %v2024_v10 = vpop.eup %2023  ;;  %v1186_v1 = vrot.slane %v1176_v5, %v2393_v6  ;;  %v1306_v14 = vmul.f32 0.0625, %v1305_v8  ;;  %v1012_v45 = vadd.f32 0.5, %v1010_v42 }
 0x270   : > { %v2026_v15 = vpop.eup %2025  ;;  %1843 = vmatprep.mubr.f32.mxu0 %v1011_v13  ;;  %v1055_v9 = vmul.f32 0.5, %v2024_v10 }
 0x271   : > { %v1187_v23 = vadd.f32 %v1186_v1, %v1181_v50  ;;  %v1220_v2 = vmul.f32 %v2026_v15, %v2630_v19  ;;  %v1308_v17 = vsub.f32 %v1306_v14, %v1307_v48  ;;  %v1188_v25 = vadd.f32 %v1186_v1, %v1182_v35  ;;  %1844 = vmatmul.mubr.f32.vlgmr.msra.gmra.mxu0 %v1012_v45 }
 0x272   : > { %v1057_v41 = vadd.f32 0.5, %v1055_v9 }
 0x273   : > { %v1189_v46 = vmul.f32 0.5, %v1187_v23  ;;  %v1221_v26 = vmul.f32 %v1220_v2, %v2643_v16  ;;  %v1226_v36 = vrot.slane %v1220_v2, %v2393_v6  ;;  %v1309_v61 = vmax.f32 %v1308_v17, 0.0 }
 0x274   : > { %v2028_v49 = vpop.eup %2027  ;;  %1846 = vmatprep.mubr.f32.mxu0 %v1057_v41  ;;  %v1190_v40 = vmul.f32 0.5, %v1188_v25 }
 0x275   : > { %v2030_v29 = vpop.eup %2029  ;;  %2039 = vtanh.f32 %v1189_v46  ;;  %v1222_v33 = vsub.f32 %v2637_v7, %v1221_v26  ;;  %v1310_v34 = vadd.f32 1e-05, %v1309_v61  ;;  %v1101_v32 = vmul.f32 0.5, %v2028_v49 }
 0x276   : > { %v2032_v60 = vpop.eup %2031  ;;  %v1266_v4 = vmul.f32 %v2030_v29, %v2630_v19  ;;  %2041 = vtanh.f32 %v1190_v40  ;;  %v1227_v11 = vmul.f32 %v1226_v36, %v2596_v31  ;;  %v1228_v16 = vmul.f32 %v2590_v22, %v1226_v36 }
 0x277   : > { %v2034_v38 = vpop.eup %2033  ;;  %v1232_v3 = vrot.slane %v1222_v33, %v2393_v6  ;;  %v1056_v63 = vmul.f32 0.5, %v2032_v60  ;;  %2043 = vrsqrt.f32 %v1310_v34  ;;  %v1103_v28 = vadd.f32 0.5, %v1101_v32 }
 0x278   : > { %v1267_v37 = vmul.f32 %v1266_v4, %v2654_v39  ;;  %v1272_v18 = vrot.slane %v1266_v4, %v2393_v6  ;;  %v1102_v27 = vmul.f32 0.5, %v2034_v38 }
 0x279   : > { %v2036_v47 = vpop.eup %2035  ;;  %v1233_v52 = vadd.f32 %v1232_v3, %v1227_v11  ;;  %v1058_v0 = vadd.f32 0.5, %v1056_v63  ;;  %v1234_v54 = vadd.f32 %v1232_v3, %v1228_v16  ;;  %v1634_v11 = vld [vmem:[#allocation6 + $0x4] ss:$0 sm:$0xff] }
 0x27a   : > { %v1268_v20 = vsub.f32 %v2637_v7, %v1267_v37  ;;  %v1147_v53 = vmul.f32 0.5, %v2036_v47  ;;  %v2038_v31 = vpop.eup %2037  ;;  %v1273_v22 = vmul.f32 %v1272_v18, %v2614_v12  ;;  %v1104_v43 = vadd.f32 0.5, %v1102_v27 }
 0x27b   : > { %v1235_v57 = vmul.f32 0.5, %v1233_v52  ;;  %1847 = vmatmul.mubr.f32.gmra.mxu0 %v1058_v0  ;;  %v1236_v56 = vmul.f32 0.5, %v1234_v54  ;;  %v1274_v39 = vmul.f32 %v2602_v44, %v1272_v18  ;;  %v1148_v59 = vmul.f32 0.5, %v2038_v31 }
 0x27c   : > { %v1278_v51 = vrot.slane %v1268_v20, %v2393_v6  ;;  %1849 = vmatprep.mubr.f32.mxu0 %v1103_v28  ;;  %v1149_v58 = vadd.f32 0.5, %v1147_v53 }
 0x27d   : > { %2045 = vtanh.f32 %v1235_v57  ;;  %v1150_v5 = vadd.f32 0.5, %v1148_v59 }
 0x27e   : > { %v1279_v62 = vadd.f32 %v1278_v51, %v1273_v22  ;;  %2047 = vtanh.f32 %v1236_v56  ;;  %v1280_v24 = vadd.f32 %v1278_v51, %v1274_v39 }
 0x27f   : > { %1850 = vmatmul.mubr.f32.gmra.mxu0 %v1104_v43 }
 0x280   : > { %v1281_v8 = vmul.f32 0.5, %v1279_v62  ;;  %1852 = vmatprep.mubr.f32.mxu0 %v1149_v58  ;;  %v1282_v48 = vmul.f32 0.5, %v1280_v24 }
 0x282   : > { %v2040_v12 = vpop.eup %2039  ;;  %2049 = vtanh.f32 %v1281_v8 }
 0x283   : > { %v2042_v13 = vpop.eup %2041  ;;  %1853 = vmatmul.mubr.f32.gmra.mxu0 %v1150_v5  ;;  %v1193_v42 = vmul.f32 0.5, %v2040_v12  ;;  %2051 = vtanh.f32 %v1282_v48 }
 0x284   : > { %v1194_v44 = vmul.f32 0.5, %v2042_v13  ;;  %v2044_v10 = vpop.eup %2043 }
 0x285   : > { %v1195_v50 = vadd.f32 0.5, %v1193_v42  ;;  %v1312_v35 = vmul.f32 %v2044_v10, %v2630_v19 }
 0x286   : > { %v1196_v1 = vadd.f32 0.5, %v1194_v44 }
 0x287   : > { %1855 = vmatprep.mubr.f32.mxu0 %v1195_v50  ;;  %v1313_v14 = vmul.f32 %v1312_v35, %v2679_v21  ;;  %v1318_v15 = vrot.slane %v1312_v35, %v2393_v6 }
 0x288   : > { %1856 = vmatmul.mubr.f32.gmra.mxu0 %v1196_v1 }
 0x289   : > { %v1314_v9 = vsub.f32 %v2637_v7, %v1313_v14  ;;  %v1319_v17 = vmul.f32 %v1318_v15, %v2628_v55  ;;  %v1320_v25 = vmul.f32 %v2624_v30, %v1318_v15 }
 0x28a   : > { %v2046_v45 = vpop.eup %2045 }
 0x28b   : > { %v2048_v23 = vpop.eup %2047  ;;  %v1239_v2 = vmul.f32 0.5, %v2046_v45  ;;  %v1324_v41 = vrot.slane %v1314_v9, %v2393_v6 }
 0x28c   : > { %v1240_v46 = vmul.f32 0.5, %v2048_v23 }
 0x28d   : > { %v1241_v19 = vadd.f32 0.5, %v1239_v2  ;;  %v1325_v26 = vadd.f32 %v1324_v41, %v1319_v17  ;;  %v1326_v36 = vadd.f32 %v1324_v41, %v1320_v25 }
 0x28e   : > { %v1242_v61 = vadd.f32 0.5, %v1240_v46 }
 0x28f   : > { %v2050_v21 = vpop.eup %2049  ;;  %1858 = vmatprep.mubr.f32.mxu0 %v1241_v19  ;;  %v1327_v40 = vmul.f32 0.5, %v1325_v26  ;;  %v1328_v29 = vmul.f32 0.5, %v1326_v36 }
 0x290   : > { %v2052_v49 = vpop.eup %2051  ;;  %1859 = vmatmul.mubr.f32.gmra.mxu0 %v1242_v61  ;;  %v1285_v7 = vmul.f32 0.5, %v2050_v21 }
 0x291   : > { %v1286_v33 = vmul.f32 0.5, %v2052_v49  ;;  %2053 = vtanh.f32 %v1327_v40 }
 0x292   : > { %v1287_v55 = vadd.f32 0.5, %v1285_v7  ;;  %2055 = vtanh.f32 %v1328_v29 }
 0x293   : > { %v1288_v30 = vadd.f32 0.5, %v1286_v33 }
 0x294   : > { %1861 = vmatprep.mubr.f32.mxu0 %v1287_v55 }
 0x295   : > { %1862 = vmatmul.mubr.f32.gmra.mxu0 %v1288_v30 }
 0x29e   : > { %v2054_v6 = vpop.eup %2053 }
 0x29f   : > { %v2056_v60 = vpop.eup %2055  ;;  %v1331_v4 = vmul.f32 0.5, %v2054_v6 }
 0x2a0   : > { %v1332_v34 = vmul.f32 0.5, %v2056_v60 }
 0x2a1   : > { %v1333_v32 = vadd.f32 0.5, %v1331_v4 }
 0x2a2   : > { %v1334_v38 = vadd.f32 0.5, %v1332_v34 }
 0x2a3   : > { %1864 = vmatprep.mubr.f32.mxu1 %v1333_v32 }
 0x2a4   : > { %1865 = vmatmul.mubr.f32.vlgmr.msra.gmra.mxu1 %v1334_v38 }
 0x331   : > { %v1845_v16 = vpop.f32.mrf.mxu0 }
 0x332   : > { %v1429_v3 = vadd.f32 %v1845_v16, %v1634_v11 }
 0x333   : > { %v1423_v63 = vpop.f32.mrf.mxu0 }
 0x334   : > { %1503 = vst [vmem:[%s2715_s26 + $0x8] sm:$0xff] %v1429_v3  ;;  %v1424_v37 = vadd.f32 %v1634_v11, %v1423_v63 }
 0x336   : > { %1502 = vst [vmem:[%s2715_s26] sm:$0xff] %v1424_v37 }
 0x33b   : > { %v1848_v18 = vpop.f32.mrf.mxu0 }
 0x33c   : > { %v1439_v28 = vadd.f32 %v1848_v18, %v1634_v11 }
 0x33d   : > { %v1433_v47 = vpop.f32.mrf.mxu0 }
 0x33e   : > { %1505 = vst [vmem:[%s2715_s26 + $0x18] sm:$0xff] %v1439_v28  ;;  %v1434_v52 = vadd.f32 %v1634_v11, %v1433_v47 }
 0x33f   : > { %v1851_v0 = vpop.f32.mrf.mxu0 }
 0x340   : > { %1504 = vst [vmem:[%s2715_s26 + $0x10] sm:$0xff] %v1434_v52  ;;  %v1449_v27 = vadd.f32 %v1851_v0, %v1634_v11 }
 0x341   : > { %v1443_v54 = vpop.f32.mrf.mxu0 }
 0x342   : > { %1507 = vst [vmem:[%s2715_s26 + $0x28] sm:$0xff] %v1449_v27  ;;  %v1444_v20 = vadd.f32 %v1634_v11, %v1443_v54 }
 0x343   : > { %v1854_v53 = vpop.f32.mrf.mxu0 }
 0x344   : > { %1506 = vst [vmem:[%s2715_s26 + $0x20] sm:$0xff] %v1444_v20  ;;  %v1459_v31 = vadd.f32 %v1854_v53, %v1634_v11 }
 0x345   : > { %v1453_v57 = vpop.f32.mrf.mxu0 }
 0x346   : > { %1509 = vst [vmem:[%s2715_s26 + $0x38] sm:$0xff] %v1459_v31  ;;  %v1454_v22 = vadd.f32 %v1634_v11, %v1453_v57 }
 0x348   : > { %1508 = vst [vmem:[%s2715_s26 + $0x30] sm:$0xff] %v1454_v22  ;;  %v1857_v43 = vpop.f32.mrf.mxu0 }
 0x349   : > { %v1469_v56 = vadd.f32 %v1857_v43, %v1634_v11 }
 0x34a   : > { %v1463_v39 = vpop.f32.mrf.mxu0 }
 0x34b   : > { %1511 = vst [vmem:[%s2715_s26 + $0x48] sm:$0xff] %v1469_v56  ;;  %v1464_v51 = vadd.f32 %v1634_v11, %v1463_v39 }
 0x34d   : > { %1510 = vst [vmem:[%s2715_s26 + $0x40] sm:$0xff] %v1464_v51 }
 0x350   : > { %v1860_v58 = vpop.f32.mrf.mxu0 }
 0x351   : > { %v1479_v59 = vadd.f32 %v1860_v58, %v1634_v11 }
 0x352   : > { %v1473_v62 = vpop.f32.mrf.mxu0 }
 0x353   : > { %1513 = vst [vmem:[%s2715_s26 + $0x58] sm:$0xff] %v1479_v59  ;;  %v1474_v24 = vadd.f32 %v1634_v11, %v1473_v62 }
 0x355   : > { %1512 = vst [vmem:[%s2715_s26 + $0x50] sm:$0xff] %v1474_v24  ;;  %v1863_v5 = vpop.f32.mrf.mxu0 }
 0x356   : > { %v1489_v8 = vadd.f32 %v1863_v5, %v1634_v11 }
 0x357   : > { %v1483_v48 = vpop.f32.mrf.mxu0 }
 0x358   : > { %1515 = vst [vmem:[%s2715_s26 + $0x68] sm:$0xff] %v1489_v8  ;;  %v1484_v12 = vadd.f32 %v1634_v11, %v1483_v48 }
 0x35a   : > { %1514 = vst [vmem:[%s2715_s26 + $0x60] sm:$0xff] %v1484_v12 }
 0x364   : > { %v1866_v13 = vpop.f32.mrf.mxu1 }
 0x365   : > { %v1499_v42 = vadd.f32 %v1866_v13, %v1634_v11 }
 0x366   : > { %v1493_v44 = vpop.f32.mrf.mxu1 }
 0x367   : > { %1517 = vst [vmem:[%s2715_s26 + $0x78] sm:$0xff] %v1499_v42  ;;  %v1494_v10 = vadd.f32 %v1634_v11, %v1493_v44 }
 0x369   : > { %1516 = vst [vmem:[%s2715_s26 + $0x70] sm:$0xff] %v1494_v10 }
 0x36a PF: > { %p14_p12 = scmp.ge.s32.totalorder %s2267_s5, 4   ;;  %s2761_s12 = smov %s2167_s13 }
 0x36b   : > { %s2762_s13 = smov %s2171_s14  ;;  %s2763_s14 = smov %s2278_s9 }
 0x36c   : > { %s2764_s15 = smov %s2267_s5  ;;  %16 = sbr.rel (!%p14_p12) target bundleno = 4 (0x4), region = 82 }
 0x371   :  { %1539 = vsyncpa [#allocation3], 1 }
 0x372   :  { %1541 = vsyncpa [#allocation3 + $0x1], 1 }
 0x373   :  { %1542 = vsyncpa [#allocation5], 1 }

</bundles_post_ra>
